<compile_context>
chip_gen: v5e
topology: v5e:2x2
jax: 0.10.0
libtpu: 0.0.40
codegen_flags: <defaults>
</compile_context>

<pallas_src>
import jax
import jax.numpy as jnp
from jax.experimental import pallas as pl
from jax.experimental.pallas import tpu as pltpu

BN_EPS = 1e-5


def _edge_encoder_kernel(ea_ref, et_ref, wm_ref, w1e_ref, b1t_ref, w2b_ref, bt_ref, out_ref):
    # main branch (packed): (R, pack*D_in) @ (pack*D_in, pack*embed), bf16 operands, f32 acc
    main = jnp.dot(ea_ref[...], wm_ref[...], preferred_element_type=jnp.float32)

    # type branch, Linear(2->64) folded with eval-mode BN:
    # (R, 2*pack) @ (2*pack, 64*pack) block-diagonal, small-K bf16 MXU pass, f32 acc
    h = jnp.dot(et_ref[...], w1e_ref[...], preferred_element_type=jnp.float32)
    h = jnp.maximum(h + b1t_ref[...], 0.0)        # folded bias + ReLU on the VPU (f32)

    # second Linear (type_weight folded in), bf16 operands on MXU, f32 acc
    t = jnp.dot(h.astype(jnp.bfloat16), w2b_ref[...], preferred_element_type=jnp.float32)

    # folded total bias, lane-dense 128-wide store
    out_ref[...] = (main + t + bt_ref[...]).astype(out_ref.dtype)


def _fold_and_pack_params(p, pack):
    """Fold eval-mode BN + type_weight + biases, build block-diagonal (packed) weights."""
    scale = p["bn_g"] / jnp.sqrt(p["bn_rv"] + BN_EPS)          # (1, 64)
    w1f = p["w1"] * scale                                      # (2, 64)
    b1f = (p["b1"] - p["bn_rm"]) * scale + p["bn_b"]           # (1, 64)
    tw = p["tw"][0, 0]
    w2f = p["w2"] * tw                                         # (64, embed)
    b_total = p["bm"] + tw * p["b2"]                           # (1, embed)

    eye = jnp.eye(pack, dtype=jnp.float32)
    wm_block = jnp.kron(eye, p["wm"]).astype(jnp.bfloat16)     # (pack*D_in, pack*embed)
    w1e = jnp.kron(eye, w1f).astype(jnp.bfloat16)              # (pack*2,    pack*64)
    b1t = jnp.tile(b1f, (1, pack)).astype(jnp.float32)         # (1,         pack*64)
    w2_block = jnp.kron(eye, w2f).astype(jnp.bfloat16)         # (pack*64,   pack*embed)
    bt = jnp.tile(b_total, (1, pack)).astype(jnp.float32)      # (1,         pack*embed)
    return wm_block, w1e, b1t, w2_block, bt


def sine_pos_both_edge_encoder(edge_attr, edge_type, params, *, tile_e=2048):
    E, d_in = edge_attr.shape
    embed = params["wm"].shape[1]

    # pack `pack` consecutive edges per 128-lane row (lane-dense loads/stores) when possible
    pack = 128 // embed if (embed <= 128 and 128 % embed == 0) else 1
    row_align = pack * 8  # tile must be a multiple of pack (row packing) and 8*pack (sublanes)

    # clamp tile to the rounded-up edge count (no over-padding of small inputs)
    tile_cap = pl.cdiv(E, row_align) * row_align
    tile_e = max(row_align, min((tile_e // row_align) * row_align, tile_cap))
    n_blocks = pl.cdiv(E, tile_e)
    E_pad = n_blocks * tile_e
    tile_rows = tile_e // pack

    if E_pad != E:
        pad = ((0, E_pad - E), (0, 0))
        edge_attr = jnp.pad(edge_attr, pad)
        edge_type = jnp.pad(edge_type, pad)

    ea_packed = edge_attr.reshape(E_pad // pack, pack * d_in).astype(jnp.bfloat16)
    et_packed = edge_type.reshape(E_pad // pack, pack * 2).astype(jnp.bfloat16)

    wm_block, w1e, b1t, w2_block, bt = _fold_and_pack_params(params, pack)

    grid_spec = pltpu.PrefetchScalarGridSpec(
        num_scalar_prefetch=0,
        grid=(n_blocks,),
        in_specs=[
            pl.BlockSpec((tile_rows, pack * d_in), lambda i: (i, 0)),
            pl.BlockSpec((tile_rows, pack * 2), lambda i: (i, 0)),
            pl.BlockSpec(wm_block.shape, lambda i: (0, 0)),
            pl.BlockSpec(w1e.shape, lambda i: (0, 0)),
            pl.BlockSpec(b1t.shape, lambda i: (0, 0)),
            pl.BlockSpec(w2_block.shape, lambda i: (0, 0)),
            pl.BlockSpec(bt.shape, lambda i: (0, 0)),
        ],
        out_specs=pl.BlockSpec((tile_rows, pack * embed), lambda i: (i, 0)),
    )

    out_packed = pl.pallas_call(
        _edge_encoder_kernel,
        out_shape=jax.ShapeDtypeStruct((E_pad // pack, pack * embed), jnp.float32),
        grid_spec=grid_spec,
        compiler_params=pltpu.CompilerParams(dimension_semantics=("parallel",)),
    )(ea_packed, et_packed, wm_block, w1e, b1t, w2_block, bt)

    # free row-major un-packing back to (E, embed)
    return out_packed.reshape(E_pad, embed)[:E]


def _reference(edge_attr, edge_type, p):
    main = edge_attr @ p["wm"] + p["bm"]
    h = edge_type @ p["w1"] + p["b1"]
    h = (h - p["bn_rm"]) / jnp.sqrt(p["bn_rv"] + BN_EPS) * p["bn_g"] + p["bn_b"]
    h = jnp.maximum(h, 0.0)
    t = h @ p["w2"] + p["b2"]
    return main + t * p["tw"][0, 0]


def _init_params(key, d_in, embed_dim, hidden=64):
    ks = jax.random.split(key, 10)
    return {
        "wm": jax.random.normal(ks[0], (d_in, embed_dim), jnp.float32) * 0.1,
        "bm": jax.random.normal(ks[1], (1, embed_dim), jnp.float32) * 0.1,
        "w1": jax.random.normal(ks[2], (2, hidden), jnp.float32) * 0.1,
        "b1": jax.random.normal(ks[3], (1, hidden), jnp.float32) * 0.1,
        "bn_rm": jax.random.normal(ks[4], (1, hidden), jnp.float32) * 0.1,
        "bn_rv": jax.random.uniform(ks[5], (1, hidden), jnp.float32, 0.5, 1.5),
        "bn_g": jax.random.normal(ks[6], (1, hidden), jnp.float32) * 0.1 + 1.0,
        "bn_b": jax.random.normal(ks[7], (1, hidden), jnp.float32) * 0.1,
        "w2": jax.random.normal(ks[8], (hidden, embed_dim), jnp.float32) * 0.1,
        "b2": jax.random.normal(ks[9], (1, embed_dim), jnp.float32) * 0.1,
        "tw": jnp.ones((1, 1), jnp.float32),  # torch.nn.Parameter(torch.tensor(1.0))
    }


if __name__ == "__main__":
    # cfg.share.dim_edge = 4, cfg.share.dim_pos = 8  ->  D_in = 32; embed_dim = 32
    dim_edge, dim_pos, embed_dim = 4, 8, 32
    d_in = dim_edge * dim_pos
    E = 2000  # ragged edge count (not a multiple of the tile) to exercise padding

    key = jax.random.PRNGKey(0)
    k_ea, k_et, k_p = jax.random.split(key, 3)

    edge_attr = jax.random.normal(k_ea, (E, d_in), jnp.float32)
    edge_type = jax.random.normal(k_et, (E, 2), jnp.float32)
    params = _init_params(k_p, d_in, embed_dim)

    run = jax.jit(lambda ea, et: sine_pos_both_edge_encoder(ea, et, params, tile_e=2048))
    out = jax.block_until_ready(run(edge_attr, edge_type))

    ref = _reference(edge_attr, edge_type, params)
    assert out.shape == (E, embed_dim)
    # bf16 MXU operands -> relaxed tolerance vs f32 reference
    assert jnp.allclose(out, ref, atol=3e-2, rtol=3e-2), "mismatch vs reference"
    print("KERNEL_OK")
</pallas_src>

<mosaic_0001>
module attributes {stable_mosaic.version = 11 : i64} {
  func.func @_edge_encoder_kernel(%arg0: i32, %arg1: memref<504x128xbf16, #tpu.memory_space<vmem>>, %arg2: memref<504x8xbf16, #tpu.memory_space<vmem>>, %arg3: memref<128x128xbf16, #tpu.memory_space<vmem>>, %arg4: memref<8x256xbf16, #tpu.memory_space<vmem>>, %arg5: memref<1x256xf32, #tpu.memory_space<vmem>>, %arg6: memref<256x128xbf16, #tpu.memory_space<vmem>>, %arg7: memref<1x128xf32, #tpu.memory_space<vmem>>, %arg8: memref<504x128xf32, #tpu.memory_space<vmem>>) attributes {dimension_semantics = [#tpu.dimension_semantics<parallel>], iteration_bounds = array<i64: 1>, scalar_prefetch = 0 : i64, scratch_operands = 0 : i64, tpu.core_type = #tpu.core_type<tc>, window_params = [{transform_indices = @transform_0, window_bounds = array<i64: 504, 128>}, {transform_indices = @transform_1, window_bounds = array<i64: 504, 8>}, {pipeline_mode = #tpu.pipeline_mode<synchronous>, transform_indices = @transform_2, window_bounds = array<i64: 128, 128>}, {pipeline_mode = #tpu.pipeline_mode<synchronous>, transform_indices = @transform_3, window_bounds = array<i64: 8, 256>}, {pipeline_mode = #tpu.pipeline_mode<synchronous>, transform_indices = @transform_4, window_bounds = array<i64: 1, 256>}, {pipeline_mode = #tpu.pipeline_mode<synchronous>, transform_indices = @transform_5, window_bounds = array<i64: 256, 128>}, {pipeline_mode = #tpu.pipeline_mode<synchronous>, transform_indices = @transform_6, window_bounds = array<i64: 1, 128>}, {transform_indices = @transform_7, window_bounds = array<i64: 504, 128>}]} {
    %c0 = arith.constant 0 : index
    %c0_0 = arith.constant 0 : index
    %0 = vector.load %arg1[%c0, %c0_0] : memref<504x128xbf16, #tpu.memory_space<vmem>>, vector<504x128xbf16>
    %c0_1 = arith.constant 0 : index
    %c0_2 = arith.constant 0 : index
    %1 = vector.load %arg3[%c0_1, %c0_2] : memref<128x128xbf16, #tpu.memory_space<vmem>>, vector<128x128xbf16>
    %cst = arith.constant dense<0.000000e+00> : vector<504x128xf32>
    %2 = tpu.matmul %0, %1, %cst {dimension_numbers = #tpu.dot_dimension_numbers<[1], [0], [0], [1], [0, 0, 1, 1], [], []>} : vector<504x128xbf16>, vector<128x128xbf16>, vector<504x128xf32> -> vector<504x128xf32>
    %c0_3 = arith.constant 0 : index
    %c0_4 = arith.constant 0 : index
    %3 = vector.load %arg2[%c0_3, %c0_4] : memref<504x8xbf16, #tpu.memory_space<vmem>>, vector<504x8xbf16>
    %c0_5 = arith.constant 0 : index
    %c0_6 = arith.constant 0 : index
    %4 = vector.load %arg4[%c0_5, %c0_6] : memref<8x256xbf16, #tpu.memory_space<vmem>>, vector<8x256xbf16>
    %cst_7 = arith.constant dense<0.000000e+00> : vector<504x256xf32>
    %5 = tpu.matmul %3, %4, %cst_7 {dimension_numbers = #tpu.dot_dimension_numbers<[1], [0], [0], [1], [0, 0, 1, 1], [], []>} : vector<504x8xbf16>, vector<8x256xbf16>, vector<504x256xf32> -> vector<504x256xf32>
    %c0_8 = arith.constant 0 : index
    %c0_9 = arith.constant 0 : index
    %6 = vector.load %arg5[%c0_8, %c0_9] : memref<1x256xf32, #tpu.memory_space<vmem>>, vector<1x256xf32>
    %7 = vector.broadcast %6 : vector<1x256xf32> to vector<504x256xf32>
    %8 = arith.addf %5, %7 : vector<504x256xf32>
    %cst_10 = arith.constant 0.000000e+00 : f32
    %9 = vector.broadcast %cst_10 : f32 to vector<504x256xf32>
    %10 = arith.maximumf %8, %9 : vector<504x256xf32>
    %11 = arith.truncf %10 : vector<504x256xf32> to vector<504x256xbf16>
    %c0_11 = arith.constant 0 : index
    %c0_12 = arith.constant 0 : index
    %12 = vector.load %arg6[%c0_11, %c0_12] : memref<256x128xbf16, #tpu.memory_space<vmem>>, vector<256x128xbf16>
    %cst_13 = arith.constant dense<0.000000e+00> : vector<504x128xf32>
    %13 = tpu.matmul %11, %12, %cst_13 {dimension_numbers = #tpu.dot_dimension_numbers<[1], [0], [0], [1], [0, 0, 1, 1], [], []>} : vector<504x256xbf16>, vector<256x128xbf16>, vector<504x128xf32> -> vector<504x128xf32>
    %14 = arith.addf %2, %13 : vector<504x128xf32>
    %c0_14 = arith.constant 0 : index
    %c0_15 = arith.constant 0 : index
    %15 = vector.load %arg7[%c0_14, %c0_15] : memref<1x128xf32, #tpu.memory_space<vmem>>, vector<1x128xf32>
    %16 = vector.broadcast %15 : vector<1x128xf32> to vector<504x128xf32>
    %17 = arith.addf %14, %16 : vector<504x128xf32>
    %c0_16 = arith.constant 0 : index
    %c0_17 = arith.constant 0 : index
    %18 = vector.load %arg8[%c0_16, %c0_17] : memref<504x128xf32, #tpu.memory_space<vmem>>, vector<504x128xf32>
    tpu.vector_store %arg8[%c0_16, %c0_17], %17 {strides = array<i32>} : memref<504x128xf32, #tpu.memory_space<vmem>>, vector<504x128xf32>,
    return
  }
  func.func @transform_0(%arg0: i32) -> (i32, i32) {
    %c0_i32 = arith.constant 0 : i32
    %c0_i32_0 = arith.constant 0 : i32
    return %arg0, %c0_i32 : i32, i32
  }
  func.func @transform_1(%arg0: i32) -> (i32, i32) {
    %c0_i32 = arith.constant 0 : i32
    %c0_i32_0 = arith.constant 0 : i32
    return %arg0, %c0_i32 : i32, i32
  }
  func.func @transform_2(%arg0: i32) -> (i32, i32) {
    %c0_i32 = arith.constant 0 : i32
    %c0_i32_0 = arith.constant 0 : i32
    %c0_i32_1 = arith.constant 0 : i32
    return %c0_i32, %c0_i32_0 : i32, i32
  }
  func.func @transform_3(%arg0: i32) -> (i32, i32) {
    %c0_i32 = arith.constant 0 : i32
    %c0_i32_0 = arith.constant 0 : i32
    %c0_i32_1 = arith.constant 0 : i32
    return %c0_i32, %c0_i32_0 : i32, i32
  }
  func.func @transform_4(%arg0: i32) -> (i32, i32) {
    %c0_i32 = arith.constant 0 : i32
    %c0_i32_0 = arith.constant 0 : i32
    %c0_i32_1 = arith.constant 0 : i32
    return %c0_i32, %c0_i32_0 : i32, i32
  }
  func.func @transform_5(%arg0: i32) -> (i32, i32) {
    %c0_i32 = arith.constant 0 : i32
    %c0_i32_0 = arith.constant 0 : i32
    %c0_i32_1 = arith.constant 0 : i32
    return %c0_i32, %c0_i32_0 : i32, i32
  }
  func.func @transform_6(%arg0: i32) -> (i32, i32) {
    %c0_i32 = arith.constant 0 : i32
    %c0_i32_0 = arith.constant 0 : i32
    %c0_i32_1 = arith.constant 0 : i32
    return %c0_i32, %c0_i32_0 : i32, i32
  }
  func.func @transform_7(%arg0: i32) -> (i32, i32) {
    %c0_i32 = arith.constant 0 : i32
    %c0_i32_0 = arith.constant 0 : i32
    return %arg0, %c0_i32 : i32, i32
  }
}

</mosaic_0001>

<bundles_post_ra>
// kernel: _lambda_.1
= control target key start
LH: loop header
LB: loop body
LE: loop exit
PB: predicated region body
PF: predicated region fallthrough
CT: control target
= control target key end

     0   :  { %vm436_vm0 = vcmask 1043456   ;;  %vm339_vm1 = vcmask 64512   ;;  %s3746_s3 = inlined_call_operand.vmem [shape: bf16[8,256], index: 3, kind: input, shape index: {}]   ;;  %s3747_s1 = inlined_call_operand.vmem [shape: bf16[504,8], index: 1, kind: input, shape index: {}]   ;;  %s3748_s5 = inlined_call_operand.vmem [shape: bf16[256,128], index: 5, kind: input, shape index: {}]   ;;  %s3749_s4 = inlined_call_operand.vmem [shape: f32[1,256], index: 4, kind: input, shape index: {}]   ;;  %s3750_s2 = inlined_call_operand.vmem [shape: bf16[128,128], index: 2, kind: input, shape index: {}]   ;;  %s3751_s0 = inlined_call_operand.vmem [shape: bf16[504,128], index: 0, kind: input, shape index: {}]   ;;  %s3752_s6 = inlined_call_operand.vmem [shape: f32[1,128], index: 6, kind: input, shape index: {}]   ;;  %s3753_s7 = inlined_call_operand.vmem [shape: f32[504,128], index: 7, kind: output, shape index: {}]  }
   0x1   :  { %v169_v0 = vld [vmem:[%s3746_s3] sm:$0xff]  ;;  %v2543_v7 = vld [vmem:[%s3747_s1 + $0x48] sm:$0xff]  ;;  %v2548_v9 = vld [vmem:[%s3747_s1 + $0x90] sm:$0xff] }
   0x2   :  { %v335_v1 = vunpack.c.l.b16 %v169_v0  ;;  %v336_v2 = vunpack.c.h.b16 %v169_v0  ;;  %v2538_v6 = vld [vmem:[%s3747_s1] sm:$0xff]  ;;  %v2559_v10 = vld [vmem:[%s3747_s1 + $0x8] sm:$0xff]  ;;  %v2564_v11 = vld [vmem:[%s3747_s1 + $0x50] sm:$0xff] }
   0x3   :  { %v2439_v12 = vld [vmem:[%s3747_s1 + $0x98] sm:$0xff]  ;;  %v2577_v13 = vld [vmem:[%s3747_s1 + $0x10] sm:$0xff]  ;;  %v2440_v15 = vld [vmem:[%s3747_s1 + $0xa0] sm:$0xff] }
   0x4   :  { %v337_v3 = vpack.c.b16 %v335_v1, %v335_v1  ;;  %v338_v4 = vpack.c.b16 %v336_v2, %v336_v2  ;;  %v2582_v14 = vld [vmem:[%s3747_s1 + $0x58] sm:$0xff]  ;;  %v2600_v17 = vld [vmem:[%s3747_s1 + $0x60] sm:$0xff]  ;;  %v2441_v18 = vld [vmem:[%s3747_s1 + $0xa8] sm:$0xff] }
   0x5   :  { %v2595_v16 = vld [vmem:[%s3747_s1 + $0x18] sm:$0xff]  ;;  %v2613_v19 = vld [vmem:[%s3747_s1 + $0x20] sm:$0xff]  ;;  %v2618_v20 = vld [vmem:[%s3747_s1 + $0x68] sm:$0xff] }
   0x6   :  { %v438_v5 = vsel %vm436_vm0, %v337_v3, 0  ;;  %v441_v8 = vsel %vm436_vm0, %v338_v4, 0  ;;  %v2442_v21 = vld [vmem:[%s3747_s1 + $0xb0] sm:$0xff]  ;;  %v2458_v22 = vld [vmem:[%s3748_s5 + $0x38] sm:$0xff]  ;;  %v2634_v23 = vld [vmem:[%s3747_s1 + $0x28] sm:$0xff] }
   0x7   :  { %450 = vmatpush.bf16.msra.mxu0 %v438_v5  ;;  %2467 = vmatpush.bf16.msra.mxu1 %v438_v5  ;;  %v2639_v24 = vld [vmem:[%s3747_s1 + $0x70] sm:$0xff]  ;;  %v2443_v25 = vld [vmem:[%s3747_s1 + $0xb8] sm:$0xff]  ;;  %v2456_v27 = vld [vmem:[%s3748_s5 + $0x28] sm:$0xff] }
   0x8   :  { %2468 = vmatpush.bf16.msra.mxu2 %v438_v5  ;;  %2469 = vmatpush.bf16.msra.mxu3 %v438_v5  ;;  %v2457_v26 = vld [vmem:[%s3748_s5 + $0x30] sm:$0xff]  ;;  %v2455_v28 = vld [vmem:[%s3748_s5 + $0x20] sm:$0xff]  ;;  %v2454_v29 = vld [vmem:[%s3748_s5 + $0x18] sm:$0xff] }
   0x9   :  { %v2664_v30 = vld [vmem:[%s3747_s1 + $0x30] sm:$0xff]  ;;  %v2669_v31 = vld [vmem:[%s3747_s1 + $0x78] sm:$0xff]  ;;  %v2444_v32 = vld [vmem:[%s3747_s1 + $0xc0] sm:$0xff] }
   0xa   :  { %2097 = vmatmul.msk.bf16.vlgmr.msra.gmra.mxu0 %vm339_vm1, %v2538_v6  ;;  %2106 = vmatmul.msk.bf16.vlgmr.msra.gmra.mxu1 %vm339_vm1, %v2543_v7  ;;  %v2453_v33 = vld [vmem:[%s3748_s5 + $0x10] sm:$0xff]  ;;  %v2452_v34 = vld [vmem:[%s3748_s5 + $0x8] sm:$0xff]  ;;  %v2451_v35 = vld [vmem:[%s3748_s5] sm:$0xff] }
   0xb   :  { %618 = vmatpush.bf16.msrb.mxu1 %v441_v8  ;;  %2115 = vmatmul.msk.bf16.vlgmr.msra.gmra.mxu2 %vm339_vm1, %v2548_v9  ;;  %v2691_v36 = vld [vmem:[%s3747_s1 + $0x38] sm:$0xff]  ;;  %v2696_v37 = vld [vmem:[%s3747_s1 + $0x80] sm:$0xff]  ;;  %v2445_v38 = vld [vmem:[%s3747_s1 + $0xc8] sm:$0xff] }
   0xc   :  { %1097 = vmatpush.bf16.msrb.mxu2 %v2458_v22  ;;  %v2709_v39 = vld [vmem:[%s3747_s1 + $0x40] sm:$0xff]  ;;  %v2714_v40 = vld [vmem:[%s3747_s1 + $0x88] sm:$0xff]  ;;  %v2743_v61 = vld [vmem:[%s3750_s2 + $0x38] sm:$0xff] }
   0xd   :  { %v2719_v41 = vld [vmem:[%s3749_s4] sm:$0x3]  ;;  %v2446_v62 = vld [vmem:[%s3747_s1 + $0xd0] sm:$0xff]  ;;  %1671 = vmatpush.bf16.msrb.mxu0 %v2743_v61 }
   0xe   :  { %v2722_v44 = vperm.slane %v2719_v41, 0  ;;  %2123 = vmatmul.msk.bf16.vlgmr.msra.gmra.mxu3 %vm339_vm1, %v2446_v62 }
  0x10   :  { %1098 = vmatpush.bf16.msrb.mxu2 %v2457_v26 }
  0x14   :  { %1099 = vmatpush.bf16.msrb.mxu2 %v2456_v27 }
  0x18   :  { %1100 = vmatpush.bf16.msrb.mxu2 %v2455_v28  ;;  %v2768_v28 = vld [vmem:[%s3750_s2 + $0x30] sm:$0xff] }
  0x19   :  { %1672 = vmatpush.bf16.msrb.mxu0 %v2768_v28 }
  0x1a   :  { %2098 = vmatmul.msk.bf16.gmra.mxu0 %vm339_vm1, %v2559_v10  ;;  %2107 = vmatmul.msk.bf16.gmra.mxu1 %vm339_vm1, %v2564_v11 }
  0x1b   :  { %2116 = vmatmul.msk.bf16.gmra.mxu2 %vm339_vm1, %v2439_v12 }
  0x1c   :  { %1101 = vmatpush.bf16.msrb.mxu2 %v2454_v29  ;;  %v2447_v29 = vld [vmem:[%s3747_s1 + $0xd8] sm:$0xff] }
  0x1e   :  { %2124 = vmatmul.msk.bf16.gmra.mxu3 %vm339_vm1, %v2447_v29  ;;  %v2821_v29 = vld [vmem:[%s3750_s2 + $0x20] sm:$0xff] }
  0x20   :  { %1102 = vmatpush.bf16.msrb.mxu2 %v2453_v33 }
  0x24   :  { %1103 = vmatpush.bf16.msrb.mxu2 %v2452_v34 }
  0x28   :  { %1104 = vmatpush.bf16.msrb.mxu2 %v2451_v35 }
  0x2a   :  { %2099 = vmatmul.msk.bf16.gmra.mxu0 %vm339_vm1, %v2577_v13  ;;  %2108 = vmatmul.msk.bf16.gmra.mxu1 %vm339_vm1, %v2582_v14 }
  0x2b   :  { %2117 = vmatmul.msk.bf16.gmra.mxu2 %vm339_vm1, %v2440_v15 }
  0x3a   :  { %2100 = vmatmul.msk.bf16.gmra.mxu0 %vm339_vm1, %v2595_v16  ;;  %2109 = vmatmul.msk.bf16.gmra.mxu1 %vm339_vm1, %v2600_v17 }
  0x3b   :  { %2118 = vmatmul.msk.bf16.gmra.mxu2 %vm339_vm1, %v2441_v18 }
  0x4a   :  { %2101 = vmatmul.msk.bf16.gmra.mxu0 %vm339_vm1, %v2613_v19  ;;  %2110 = vmatmul.msk.bf16.gmra.mxu1 %vm339_vm1, %v2618_v20 }
  0x4b   :  { %2119 = vmatmul.msk.bf16.gmra.mxu2 %vm339_vm1, %v2442_v21 }
  0x5a   :  { %2102 = vmatmul.msk.bf16.gmra.mxu0 %vm339_vm1, %v2634_v23  ;;  %2111 = vmatmul.msk.bf16.gmra.mxu1 %vm339_vm1, %v2639_v24 }
  0x5b   :  { %2120 = vmatmul.msk.bf16.gmra.mxu2 %vm339_vm1, %v2443_v25  ;;  %v2466_v25 = vld [vmem:[%s3748_s5 + $0x78] sm:$0xff] }
  0x5c   :  { %1265 = vmatpush.bf16.msrb.mxu3 %v2466_v25 }
  0x6a   :  { %2103 = vmatmul.msk.bf16.gmra.mxu0 %vm339_vm1, %v2664_v30  ;;  %2112 = vmatmul.msk.bf16.gmra.mxu1 %vm339_vm1, %v2669_v31 }
  0x6b   :  { %2121 = vmatmul.msk.bf16.gmra.mxu2 %vm339_vm1, %v2444_v32 }
  0x7a   :  { %2104 = vmatmul.msk.bf16.gmra.mxu0 %vm339_vm1, %v2691_v36  ;;  %2113 = vmatmul.msk.bf16.gmra.mxu1 %vm339_vm1, %v2696_v37 }
  0x7b   :  { %2122 = vmatmul.msk.bf16.gmra.mxu2 %vm339_vm1, %v2445_v38 }
  0x87   :  { %v452_v42 = vpop.f32.mrf.mxu0  ;;  %v497_v43 = vpop.f32.mrf.mxu1 }
  0x88   :  { %v453_v45 = vadd.f32 %v452_v42, %v2722_v44  ;;  %v498_v46 = vadd.f32 %v497_v43, %v2722_v44 }
  0x8a   :  { %2105 = vmatmul.msk.bf16.gmra.mxu0 %vm339_vm1, %v2709_v39  ;;  %2114 = vmatmul.msk.bf16.gmra.mxu1 %vm339_vm1, %v2714_v40  ;;  %v779_v50 = vmax.f32 %v453_v45, 0.0  ;;  %v815_v53 = vmax.f32 %v498_v46, 0.0 }
  0x8e   :  { %v2730_v47 = vpop.f32.mrf.mxu2 }
  0x8f   :  { %v454_v48 = vpop.f32.mrf.mxu0  ;;  %v499_v49 = vpop.f32.mrf.mxu1 }
  0x90   :  { %v455_v51 = vadd.f32 %v454_v48, %v2722_v44  ;;  %v500_v52 = vadd.f32 %v499_v49, %v2722_v44  ;;  %v2465_v49 = vld [vmem:[%s3748_s5 + $0x70] sm:$0xff] }
  0x91   :  { %1266 = vmatpush.bf16.msrb.mxu3 %v2465_v49 }
  0x92   :  { %v781_v54 = vmax.f32 %v455_v51, 0.0  ;;  %v817_v55 = vmax.f32 %v500_v52, 0.0 }
  0x94   :  { %v905_v56 = vpack.c.bf16 %v781_v54, %v779_v50  ;;  %v2734_v57 = vpack.c.bf16 %v817_v55, %v815_v53  ;;  %v2793_v55 = vld [vmem:[%s3750_s2 + $0x28] sm:$0xff] }
  0x95   :  { %1673 = vmatpush.bf16.msrb.mxu0 %v2793_v55 }
  0x96   :  { %1105 = vmatmul.bf16.vlgmr.msrb.gmra.mxu2 %v905_v56  ;;  %v2736_v58 = vpop.f32.mrf.mxu2  ;;  %v2448_v56 = vld [vmem:[%s3747_s1 + $0xe0] sm:$0xff] }
  0x97   :  { %v457_v59 = vpop.f32.mrf.mxu0  ;;  %v502_v60 = vpop.f32.mrf.mxu1  ;;  %2125 = vmatmul.msk.bf16.gmra.mxu3 %vm339_vm1, %v2448_v56  ;;  %v2462_v56 = vld [vmem:[%s3748_s5 + $0x58] sm:$0xff] }
  0x98   :  { %v458_v63 = vadd.f32 %v457_v59, %v2722_v44  ;;  %v503_v0 = vadd.f32 %v502_v60, %v2722_v44  ;;  %v2464_v59 = vld [vmem:[%s3748_s5 + $0x68] sm:$0xff] }
  0x99   :  { %1267 = vmatpush.bf16.msrb.mxu3 %v2464_v59  ;;  %1674 = vmatpush.bf16.msrb.mxu0 %v2821_v29 }
  0x9a   :  { %2129 = vmatmul.msk.bf16.vlgmr.msrb.gmra.mxu1 %vm339_vm1, %v2538_v6  ;;  %v783_v4 = vmax.f32 %v458_v63, 0.0  ;;  %v819_v8 = vmax.f32 %v503_v0, 0.0 }
  0x9e   :  { %v2752_v1 = vpop.f32.mrf.mxu2 }
  0x9f   :  { %v459_v2 = vpop.f32.mrf.mxu0  ;;  %v504_v3 = vpop.f32.mrf.mxu1 }
  0xa0   :  { %v460_v5 = vadd.f32 %v459_v2, %v2722_v44  ;;  %v505_v6 = vadd.f32 %v504_v3, %v2722_v44 }
  0xa2   :  { %v785_v12 = vmax.f32 %v460_v5, 0.0  ;;  %v821_v15 = vmax.f32 %v505_v6, 0.0 }
  0xa4   :  { %v907_v18 = vpack.c.bf16 %v785_v12, %v783_v4  ;;  %v2756_v21 = vpack.c.bf16 %v821_v15, %v819_v8 }
  0xa6   :  { %1110 = vmatmul.bf16.gmra.mxu2 %v907_v18  ;;  %v2758_v22 = vpop.f32.mrf.mxu2 }
  0xa7   :  { %v462_v26 = vpop.f32.mrf.mxu0  ;;  %v507_v27 = vpop.f32.mrf.mxu1 }
  0xa8   :  { %v463_v32 = vadd.f32 %v462_v26, %v2722_v44  ;;  %v508_v33 = vadd.f32 %v507_v27, %v2722_v44  ;;  %v2463_v27 = vld [vmem:[%s3748_s5 + $0x60] sm:$0xff] }
  0xa9   :  { %1268 = vmatpush.bf16.msrb.mxu3 %v2463_v27  ;;  %v2461_v27 = vld [vmem:[%s3748_s5 + $0x50] sm:$0xff] }
  0xaa   :  { %2130 = vmatmul.msk.bf16.gmra.mxu1 %vm339_vm1, %v2559_v10  ;;  %v787_v38 = vmax.f32 %v463_v32, 0.0  ;;  %v823_v45 = vmax.f32 %v508_v33, 0.0  ;;  %v2449_v32 = vld [vmem:[%s3747_s1 + $0xe8] sm:$0xff] }
  0xab   :  { %2126 = vmatmul.msk.bf16.gmra.mxu3 %vm339_vm1, %v2449_v32 }
  0xad   :  { %1269 = vmatpush.bf16.msrb.mxu3 %v2462_v56 }
  0xae   :  { %v2777_v34 = vpop.f32.mrf.mxu2 }
  0xaf   :  { %v464_v10 = vpop.f32.mrf.mxu0  ;;  %v509_v35 = vpop.f32.mrf.mxu1 }
  0xb0   :  { %v465_v42 = vadd.f32 %v464_v10, %v2722_v44  ;;  %v510_v43 = vadd.f32 %v509_v35, %v2722_v44 }
  0xb1   :  { %1270 = vmatpush.bf16.msrb.mxu3 %v2461_v27 }
  0xb2   :  { %v789_v46 = vmax.f32 %v465_v42, 0.0  ;;  %v825_v48 = vmax.f32 %v510_v43, 0.0 }
  0xb4   :  { %v909_v50 = vpack.c.bf16 %v789_v46, %v787_v38  ;;  %v2784_v51 = vpack.c.bf16 %v825_v48, %v823_v45 }
  0xb6   :  { %1115 = vmatmul.bf16.gmra.mxu2 %v909_v50  ;;  %v2786_v52 = vpop.f32.mrf.mxu2 }
  0xb7   :  { %v467_v53 = vpop.f32.mrf.mxu0  ;;  %v512_v54 = vpop.f32.mrf.mxu1 }
  0xb8   :  { %v468_v60 = vadd.f32 %v467_v53, %v2722_v44 }
  0xba   :  { %2131 = vmatmul.msk.bf16.gmra.mxu1 %vm339_vm1, %v2577_v13  ;;  %v513_v13 = vadd.f32 %v512_v54, %v2722_v44  ;;  %v791_v2 = vmax.f32 %v468_v60, 0.0 }
  0xbc   :  { %v827_v5 = vmax.f32 %v513_v13, 0.0  ;;  %v2450_v13 = vld [vmem:[%s3747_s1 + $0xf0] sm:$0xff] }
  0xbd   :  { %2127 = vmatmul.msk.bf16.gmra.mxu3 %vm339_vm1, %v2450_v13 }
  0xbe   :  { %v2805_v62 = vpop.f32.mrf.mxu2 }
  0xbf   :  { %v469_v63 = vpop.f32.mrf.mxu0  ;;  %v514_v0 = vpop.f32.mrf.mxu1 }
  0xc0   :  { %v470_v3 = vadd.f32 %v469_v63, %v2722_v44  ;;  %v515_v4 = vadd.f32 %v514_v0, %v2722_v44 }
  0xc2   :  { %v793_v6 = vmax.f32 %v470_v3, 0.0  ;;  %v829_v8 = vmax.f32 %v515_v4, 0.0 }
  0xc4   :  { %v911_v12 = vpack.c.bf16 %v793_v6, %v791_v2  ;;  %v2809_v15 = vpack.c.bf16 %v829_v8, %v827_v5 }
  0xc6   :  { %1120 = vmatmul.bf16.gmra.mxu2 %v911_v12  ;;  %v2811_v18 = vpop.f32.mrf.mxu2 }
  0xc7   :  { %v472_v25 = vpop.f32.mrf.mxu0  ;;  %v517_v26 = vpop.f32.mrf.mxu1 }
  0xc8   :  { %v473_v33 = vadd.f32 %v472_v25, %v2722_v44 }
  0xca   :  { %2132 = vmatmul.msk.bf16.gmra.mxu1 %vm339_vm1, %v2595_v16  ;;  %v518_v16 = vadd.f32 %v517_v26, %v2722_v44  ;;  %v795_v42 = vmax.f32 %v473_v33, 0.0  ;;  %v2856_v26 = vld [vmem:[%s3750_s2 + $0x18] sm:$0xff] }
  0xcb   :  { %1675 = vmatpush.bf16.msrb.mxu0 %v2856_v26 }
  0xcc   :  { %v831_v46 = vmax.f32 %v518_v16, 0.0 }
  0xce   :  { %v2830_v10 = vpop.f32.mrf.mxu2 }
  0xcf   :  { %v474_v35 = vpop.f32.mrf.mxu0  ;;  %v519_v38 = vpop.f32.mrf.mxu1 }
  0xd0   :  { %v475_v43 = vadd.f32 %v474_v35, %v2722_v44  ;;  %v520_v45 = vadd.f32 %v519_v38, %v2722_v44 }
  0xd2   :  { %v797_v48 = vmax.f32 %v475_v43, 0.0  ;;  %v833_v49 = vmax.f32 %v520_v45, 0.0  ;;  %v2460_v45 = vld [vmem:[%s3748_s5 + $0x48] sm:$0xff] }
  0xd3   :  { %1271 = vmatpush.bf16.msrb.mxu3 %v2460_v45 }
  0xd4   :  { %v913_v50 = vpack.c.bf16 %v797_v48, %v795_v42  ;;  %v2834_v53 = vpack.c.bf16 %v833_v49, %v831_v46  ;;  %v168_v42 = vld [vmem:[%s3747_s1 + $0xf8] sm:$0xf] }
  0xd5   :  { %v301_v43 = vunpack.c.l.b16 %v168_v42 }
  0xd6   :  { %1125 = vmatmul.bf16.gmra.mxu2 %v913_v50  ;;  %v2836_v54 = vpop.f32.mrf.mxu2 }
  0xd7   :  { %v477_v59 = vpop.f32.mrf.mxu0  ;;  %v522_v60 = vpop.f32.mrf.mxu1  ;;  %v2875_v48 = vpack.c.b16 %v301_v43, %v301_v43 }
  0xd8   :  { %v478_v63 = vadd.f32 %v477_v59, %v2722_v44  ;;  %v523_v0 = vadd.f32 %v522_v60, %v2722_v44 }
  0xd9   :  { %2128 = vmatmul.msk.bf16.gmra.mxu3 %vm339_vm1, %v2875_v48 }
  0xda   :  { %2133 = vmatmul.msk.bf16.gmra.mxu1 %vm339_vm1, %v2613_v19  ;;  %v799_v5 = vmax.f32 %v478_v63, 0.0  ;;  %v835_v19 = vmax.f32 %v523_v0, 0.0 }
  0xde   :  { %v2849_v2 = vpop.f32.mrf.mxu2 }
  0xdf   :  { %v479_v3 = vpop.f32.mrf.mxu0  ;;  %v524_v4 = vpop.f32.mrf.mxu1 }
  0xe0   :  { %v480_v6 = vadd.f32 %v479_v3, %v2722_v44  ;;  %v525_v8 = vadd.f32 %v524_v4, %v2722_v44  ;;  %v2414_v4 = vld [vmem:[%s3750_s2 + $0x10] sm:$0xff] }
  0xe1   :  { %1676 = vmatpush.bf16.msrb.mxu0 %v2414_v4 }
  0xe2   :  { %v801_v12 = vmax.f32 %v480_v6, 0.0  ;;  %v837_v25 = vmax.f32 %v525_v8, 0.0 }
  0xe4   :  { %v915_v32 = vpack.c.bf16 %v801_v12, %v799_v5  ;;  %v2862_v33 = vpack.c.bf16 %v837_v25, %v835_v19  ;;  %v2459_v25 = vld [vmem:[%s3748_s5 + $0x40] sm:$0xff] }
  0xe5   :  { %1272 = vmatpush.bf16.msrb.mxu3 %v2459_v25 }
  0xe6   :  { %1130 = vmatmul.bf16.gmra.mxu2 %v915_v32  ;;  %v2864_v16 = vpop.f32.mrf.mxu2 }
  0xe7   :  { %v482_v35 = vpop.f32.mrf.mxu0  ;;  %v527_v38 = vpop.f32.mrf.mxu1 }
  0xe8   :  { %v483_v46 = vadd.f32 %v482_v35, %v2722_v44  ;;  %v528_v49 = vadd.f32 %v527_v38, %v2722_v44 }
  0xe9   :  { %2470 = vmatpush.bf16.msra.mxu3 %v2743_v61 }
  0xea   :  { %2134 = vmatmul.msk.bf16.gmra.mxu1 %vm339_vm1, %v2634_v23  ;;  %v803_v59 = vmax.f32 %v483_v46, 0.0  ;;  %v839_v63 = vmax.f32 %v528_v49, 0.0 }
  0xed   :  { %2471 = vmatpush.bf16.msra.mxu3 %v2768_v28  ;;  %v2412_v28 = vld [vmem:[%s3750_s2] sm:$0xff] }
  0xee   :  { %v2882_v13 = vpop.f32.mrf.mxu2 }
  0xef   :  { %v484_v50 = vpop.f32.mrf.mxu0  ;;  %v529_v56 = vpop.f32.mrf.mxu1 }
  0xf0   :  { %v485_v23 = vadd.f32 %v484_v50, %v2722_v44  ;;  %v530_v60 = vadd.f32 %v529_v56, %v2722_v44  ;;  %v2413_v50 = vld [vmem:[%s3750_s2 + $0x8] sm:$0xff] }
  0xf1   :  { %1677 = vmatpush.bf16.msrb.mxu0 %v2413_v50  ;;  %2472 = vmatpush.bf16.msra.mxu3 %v2793_v55 }
  0xf2   :  { %v805_v0 = vmax.f32 %v485_v23, 0.0  ;;  %v841_v3 = vmax.f32 %v530_v60, 0.0 }
  0xf4   :  { %v917_v5 = vpack.c.bf16 %v805_v0, %v803_v59  ;;  %v2887_v6 = vpack.c.bf16 %v841_v3, %v839_v63  ;;  %v2381_v63 = vld [vmem:[%s3751_s0] sm:$0xff] }
  0xf5   :  { %2473 = vmatpush.bf16.msra.mxu3 %v2821_v29  ;;  %1678 = vmatpush.bf16.msrb.mxu0 %v2412_v28 }
  0xf6   :  { %1135 = vmatmul.bf16.gmra.mxu2 %v917_v5  ;;  %v2891_v12 = vpop.f32.mrf.mxu2 }
  0xf7   :  { %v487_v8 = vpop.f32.mrf.mxu0  ;;  %v532_v19 = vpop.f32.mrf.mxu1 }
  0xf8   :  { %v488_v27 = vadd.f32 %v487_v8, %v2722_v44  ;;  %v533_v32 = vadd.f32 %v532_v19, %v2722_v44  ;;  %1679 = vmatmul.bf16.vlgmr.msrb.gmra.mxu0 %v2381_v63 }
  0xf9   :  { %2474 = vmatpush.bf16.msra.mxu3 %v2856_v26  ;;  %v543_v26 = vadd.f32 %v2730_v47, %v2722_v44  ;;  %v2382_v47 = vld [vmem:[%s3751_s0 + $0x8] sm:$0xff] }
  0xfa   :  { %2135 = vmatmul.msk.bf16.gmra.mxu1 %vm339_vm1, %v2664_v30  ;;  %v807_v42 = vmax.f32 %v488_v27, 0.0  ;;  %v843_v45 = vmax.f32 %v533_v32, 0.0 }
  0xfd   :  { %2475 = vmatpush.bf16.msra.mxu3 %v2414_v4 }
  0xfe   :  { %v2905_v61 = vpop.f32.mrf.mxu2 }
  0xff   :  { %v489_v35 = vpop.f32.mrf.mxu0  ;;  %v534_v38 = vpop.f32.mrf.mxu1 }
 0x100   :  { %v490_v43 = vadd.f32 %v489_v35, %v2722_v44  ;;  %v535_v30 = vadd.f32 %v534_v38, %v2722_v44 }
 0x101   :  { %2476 = vmatpush.bf16.msra.mxu3 %v2413_v50 }
 0x102   :  { %v809_v46 = vmax.f32 %v490_v43, 0.0  ;;  %v845_v49 = vmax.f32 %v535_v30, 0.0 }
 0x104   :  { %v919_v56 = vpack.c.bf16 %v809_v46, %v807_v42  ;;  %v2907_v59 = vpack.c.bf16 %v845_v49, %v843_v45  ;;  %v545_v42 = vadd.f32 %v2736_v58, %v2722_v44  ;;  %v851_v45 = vmax.f32 %v543_v26, 0.0 }
 0x105   :  { %2477 = vmatpush.bf16.msra.mxu3 %v2412_v28  ;;  %v2935_v46 = vperm.slane %v2719_v41, 1 }
 0x106   :  { %1140 = vmatmul.bf16.gmra.mxu2 %v919_v56  ;;  %v2922_v3 = vpop.f32.mrf.mxu2  ;;  %v853_v4 = vmax.f32 %v545_v42, 0.0 }
 0x107   :  { %v492_v23 = vpop.f32.mrf.mxu0  ;;  %v537_v60 = vpop.f32.mrf.mxu1 }
 0x108   :  { %v493_v0 = vadd.f32 %v492_v23, %v2722_v44  ;;  %v538_v55 = vadd.f32 %v537_v60, %v2722_v44  ;;  %1684 = vmatmul.bf16.gmra.mxu0 %v2382_v47  ;;  %v2943_v58 = vpack.c.bf16 %v853_v4, %v851_v45  ;;  %v2948_v60 = vpop.f32.mrf.mxu3 }
 0x10a   :  { %2136 = vmatmul.msk.bf16.gmra.mxu1 %vm339_vm1, %v2691_v36  ;;  %v811_v29 = vmax.f32 %v493_v0, 0.0  ;;  %v847_v25 = vmax.f32 %v538_v55, 0.0  ;;  %v550_v0 = vadd.f32 %v2758_v22, %v2722_v44 }
 0x10f   :  { %v494_v5 = vpop.f32.mrf.mxu0  ;;  %v539_v8 = vpop.f32.mrf.mxu1 }
 0x110   :  { %v495_v19 = vadd.f32 %v494_v5, %v2722_v44  ;;  %v540_v36 = vadd.f32 %v539_v8, %v2722_v44  ;;  %v2957_v8 = vpop.f32.mrf.mxu3 }
 0x112   :  { %v813_v27 = vmax.f32 %v495_v19, 0.0  ;;  %v849_v32 = vmax.f32 %v540_v36, 0.0  ;;  %v857_v19 = vmax.f32 %v550_v0, 0.0 }
 0x114   :  { %v921_v35 = vpack.c.bf16 %v813_v27, %v811_v29  ;;  %v2926_v38 = vpack.c.bf16 %v849_v32, %v847_v25 }
 0x116   :  { %1145 = vmatmul.bf16.gmra.mxu2 %v921_v35 }
 0x117   :  { %v620_v43 = vpop.f32.mrf.mxu1 }
 0x118   :  { %v621_v49 = vadd.f32 %v620_v43, %v2935_v46  ;;  %v2970_v32 = vpop.f32.mrf.mxu3  ;;  %v555_v43 = vadd.f32 %v2786_v52, %v2722_v44 }
 0x119   :  { %v2932_v30 = vpop.f32.mrf.mxu2 }
 0x11a   :  { %2137 = vmatmul.msk.bf16.gmra.mxu1 %vm339_vm1, %v2709_v39  ;;  %v780_v41 = vmax.f32 %v621_v49, 0.0  ;;  %v548_v39 = vadd.f32 %v2752_v1, %v2722_v44  ;;  %v2383_v1 = vld [vmem:[%s3751_s0 + $0x10] sm:$0xff] }
 0x11b   :  { %1689 = vmatmul.bf16.gmra.mxu0 %v2383_v1 }
 0x11c   :  { %v855_v29 = vmax.f32 %v548_v39, 0.0 }
 0x11e   :  { %v2965_v22 = vpack.c.bf16 %v857_v19, %v855_v29  ;;  %v560_v29 = vadd.f32 %v2811_v18, %v2722_v44 }
 0x11f   :  { %v622_v50 = vpop.f32.mrf.mxu1 }
 0x120   :  { %v623_v56 = vadd.f32 %v622_v50, %v2935_v46  ;;  %v2979_v47 = vpop.f32.mrf.mxu3  ;;  %v861_v50 = vmax.f32 %v555_v43, 0.0 }
 0x121   :  { %v2946_v23 = vpop.f32.mrf.mxu2 }
 0x122   :  { %v782_v28 = vmax.f32 %v623_v56, 0.0 }
 0x124   :  { %v906_v63 = vpack.c.bf16 %v782_v28, %v780_v41 }
 0x126   :  { %1150 = vmatmul.bf16.gmra.mxu2 %v2734_v57  ;;  %1273 = vmatmul.bf16.vlgmr.msrb.gmra.mxu3 %v906_v63 }
 0x127   :  { %v625_v55 = vpop.f32.mrf.mxu1 }
 0x128   :  { %v626_v36 = vadd.f32 %v625_v55, %v2935_v46  ;;  %v2992_v63 = vpop.f32.mrf.mxu3 }
 0x129   :  { %v2955_v5 = vpop.f32.mrf.mxu2 }
 0x12a   :  { %2138 = vmatmul.msk.bf16.gmra.mxu1 %vm339_vm1, %v2543_v7  ;;  %v784_v35 = vmax.f32 %v626_v36, 0.0  ;;  %v553_v7 = vadd.f32 %v2777_v34, %v2722_v44  ;;  %v2384_v34 = vld [vmem:[%s3751_s0 + $0x18] sm:$0xff] }
 0x12b   :  { %1694 = vmatmul.bf16.gmra.mxu0 %v2384_v34 }
 0x12c   :  { %v859_v49 = vmax.f32 %v553_v7, 0.0 }
 0x12e   :  { %v2987_v52 = vpack.c.bf16 %v861_v50, %v859_v49  ;;  %v565_v50 = vadd.f32 %v2836_v54, %v2722_v44 }
 0x12f   :  { %v627_v57 = vpop.f32.mrf.mxu1 }
 0x130   :  { %v628_v25 = vadd.f32 %v627_v57, %v2935_v46  ;;  %v3001_v36 = vpop.f32.mrf.mxu3 }
 0x131   :  { %v2968_v27 = vpop.f32.mrf.mxu2 }
 0x132   :  { %v786_v26 = vmax.f32 %v628_v25, 0.0  ;;  %v865_v25 = vmax.f32 %v560_v29, 0.0 }
 0x134   :  { %v908_v42 = vpack.c.bf16 %v786_v26, %v784_v35 }
 0x136   :  { %1155 = vmatmul.bf16.gmra.mxu2 %v2756_v21  ;;  %1278 = vmatmul.bf16.gmra.mxu3 %v908_v42 }
 0x137   :  { %v630_v45 = vpop.f32.mrf.mxu1 }
 0x138   :  { %v631_v56 = vadd.f32 %v630_v45, %v2935_v46  ;;  %v3014_v7 = vpop.f32.mrf.mxu3 }
 0x139   :  { %v2977_v4 = vpop.f32.mrf.mxu2 }
 0x13a   :  { %2139 = vmatmul.msk.bf16.gmra.mxu1 %vm339_vm1, %v2564_v11  ;;  %v788_v39 = vmax.f32 %v631_v56, 0.0  ;;  %v558_v11 = vadd.f32 %v2805_v62, %v2722_v44  ;;  %v2385_v62 = vld [vmem:[%s3751_s0 + $0x20] sm:$0xff] }
 0x13b   :  { %1699 = vmatmul.bf16.gmra.mxu0 %v2385_v62  ;;  %v570_v62 = vadd.f32 %v2864_v16, %v2722_v44 }
 0x13c   :  { %v863_v57 = vmax.f32 %v558_v11, 0.0 }
 0x13e   :  { %v3009_v18 = vpack.c.bf16 %v865_v25, %v863_v57 }
 0x13f   :  { %v632_v21 = vpop.f32.mrf.mxu1 }
 0x140   :  { %v633_v41 = vadd.f32 %v632_v21, %v2935_v46  ;;  %v3023_v21 = vpop.f32.mrf.mxu3 }
 0x141   :  { %v2990_v28 = vpop.f32.mrf.mxu2 }
 0x142   :  { %v790_v0 = vmax.f32 %v633_v41, 0.0 }
 0x144   :  { %v910_v55 = vpack.c.bf16 %v790_v0, %v788_v39  ;;  %v869_v39 = vmax.f32 %v565_v50, 0.0 }
 0x146   :  { %1160 = vmatmul.bf16.gmra.mxu2 %v2784_v51  ;;  %1283 = vmatmul.bf16.gmra.mxu3 %v910_v55 }
 0x147   :  { %v635_v19 = vpop.f32.mrf.mxu1 }
 0x148   :  { %v636_v35 = vadd.f32 %v635_v19, %v2935_v46  ;;  %v3036_v29 = vpop.f32.mrf.mxu3 }
 0x149   :  { %v2999_v1 = vpop.f32.mrf.mxu2 }
 0x14a   :  { %2140 = vmatmul.msk.bf16.gmra.mxu1 %vm339_vm1, %v2582_v14  ;;  %v792_v43 = vmax.f32 %v636_v35, 0.0  ;;  %v563_v14 = vadd.f32 %v2830_v10, %v2722_v44  ;;  %v2386_v10 = vld [vmem:[%s3751_s0 + $0x28] sm:$0xff] }
 0x14b   :  { %1704 = vmatmul.bf16.gmra.mxu0 %v2386_v10 }
 0x14c   :  { %v867_v41 = vmax.f32 %v563_v14, 0.0 }
 0x14e   :  { %v3031_v54 = vpack.c.bf16 %v869_v39, %v867_v41 }
 0x14f   :  { %v637_v51 = vpop.f32.mrf.mxu1 }
 0x150   :  { %v638_v26 = vadd.f32 %v637_v51, %v2935_v46 }
 0x151   :  { %v3012_v42 = vpop.f32.mrf.mxu2 }
 0x152   :  { %v794_v45 = vmax.f32 %v638_v26, 0.0  ;;  %v3045_v26 = vpop.f32.mrf.mxu3 }
 0x154   :  { %v912_v49 = vpack.c.bf16 %v794_v45, %v792_v43  ;;  %v873_v45 = vmax.f32 %v570_v62, 0.0 }
 0x156   :  { %1165 = vmatmul.bf16.gmra.mxu2 %v2809_v15  ;;  %1288 = vmatmul.bf16.gmra.mxu3 %v912_v49 }
 0x157   :  { %v640_v34 = vpop.f32.mrf.mxu1 }
 0x158   :  { %v641_v0 = vadd.f32 %v640_v34, %v2935_v46 }
 0x159   :  { %v3021_v56 = vpop.f32.mrf.mxu2 }
 0x15a   :  { %2141 = vmatmul.msk.bf16.gmra.mxu1 %vm339_vm1, %v2600_v17  ;;  %v796_v19 = vmax.f32 %v641_v0, 0.0  ;;  %v568_v17 = vadd.f32 %v2849_v2, %v2722_v44  ;;  %v2387_v2 = vld [vmem:[%s3751_s0 + $0x30] sm:$0xff]  ;;  %v575_v0 = vadd.f32 %v2891_v12, %v2722_v44 }
 0x15b   :  { %1709 = vmatmul.bf16.gmra.mxu0 %v2387_v2 }
 0x15c   :  { %v871_v43 = vmax.f32 %v568_v17, 0.0  ;;  %v3058_v34 = vpop.f32.mrf.mxu3  ;;  %v2388_v17 = vld [vmem:[%s3751_s0 + $0x38] sm:$0xff] }
 0x15e   :  { %v3053_v16 = vpack.c.bf16 %v873_v45, %v871_v43 }
 0x15f   :  { %v642_v15 = vpop.f32.mrf.mxu1 }
 0x160   :  { %v643_v55 = vadd.f32 %v642_v15, %v2935_v46 }
 0x161   :  { %v3034_v11 = vpop.f32.mrf.mxu2 }
 0x162   :  { %v798_v57 = vmax.f32 %v643_v55, 0.0 }
 0x164   :  { %v914_v25 = vpack.c.bf16 %v798_v57, %v796_v19  ;;  %v609_v19 = vpop.f32.mrf.mxu3 }
 0x166   :  { %1170 = vmatmul.bf16.gmra.mxu2 %v2834_v53  ;;  %1293 = vmatmul.bf16.gmra.mxu3 %v914_v25  ;;  %v877_v25 = vmax.f32 %v575_v0, 0.0 }
 0x167   :  { %v645_v35 = vpop.f32.mrf.mxu1 }
 0x168   :  { %v646_v49 = vadd.f32 %v645_v35, %v2935_v46 }
 0x169   :  { %v3043_v51 = vpop.f32.mrf.mxu2 }
 0x16a   :  { %2142 = vmatmul.msk.bf16.gmra.mxu1 %vm339_vm1, %v2618_v20  ;;  %v800_v41 = vmax.f32 %v646_v49, 0.0  ;;  %v573_v20 = vadd.f32 %v2882_v13, %v2722_v44  ;;  %v580_v49 = vadd.f32 %v2922_v3, %v2722_v44 }
 0x16b   :  { %1714 = vmatmul.bf16.gmra.mxu0 %v2388_v17 }
 0x16c   :  { %v875_v57 = vmax.f32 %v573_v20, 0.0  ;;  %v2389_v20 = vld [vmem:[%s3751_s0 + $0x40] sm:$0xff] }
 0x16e   :  { %v3073_v12 = vpack.c.bf16 %v877_v25, %v875_v57 }
 0x16f   :  { %v647_v53 = vpop.f32.mrf.mxu1 }
 0x170   :  { %v648_v14 = vadd.f32 %v647_v53, %v2935_v46 }
 0x171   :  { %v3056_v50 = vpop.f32.mrf.mxu2 }
 0x172   :  { %v802_v39 = vmax.f32 %v648_v14, 0.0 }
 0x174   :  { %v916_v10 = vpack.c.bf16 %v802_v39, %v800_v41  ;;  %v881_v39 = vmax.f32 %v580_v49, 0.0 }
 0x176   :  { %1175 = vmatmul.bf16.gmra.mxu2 %v2862_v33  ;;  %1298 = vmatmul.bf16.gmra.mxu3 %v916_v10  ;;  %v1680_v10 = vpop.f32.mrf.mxu0 }
 0x177   :  { %v650_v15 = vpop.f32.mrf.mxu1 }
 0x178   :  { %v651_v13 = vadd.f32 %v650_v15, %v2935_v46 }
 0x179   :  { %v3065_v55 = vpop.f32.mrf.mxu2 }
 0x17a   :  { %2143 = vmatmul.msk.bf16.gmra.mxu1 %vm339_vm1, %v2639_v24  ;;  %v804_v43 = vmax.f32 %v651_v13, 0.0  ;;  %v578_v24 = vadd.f32 %v2905_v61, %v2722_v44 }
 0x17b   :  { %1719 = vmatmul.bf16.gmra.mxu0 %v2389_v20 }
 0x17c   :  { %v879_v41 = vmax.f32 %v578_v24, 0.0 }
 0x17e   :  { %v3091_v3 = vpack.c.bf16 %v881_v39, %v879_v41  ;;  %v1682_v25 = vpop.f32.mrf.mxu0 }
 0x17f   :  { %v652_v33 = vpop.f32.mrf.mxu1 }
 0x180   :  { %v653_v62 = vadd.f32 %v652_v33, %v2935_v46 }
 0x181   :  { %v3076_v35 = vpop.f32.mrf.mxu2 }
 0x182   :  { %v806_v45 = vmax.f32 %v653_v62, 0.0  ;;  %v2390_v62 = vld [vmem:[%s3751_s0 + $0x48] sm:$0xff] }
 0x184   :  { %v918_v2 = vpack.c.bf16 %v806_v45, %v804_v43 }
 0x186   :  { %1180 = vmatmul.bf16.gmra.mxu2 %v2887_v6  ;;  %1303 = vmatmul.bf16.gmra.mxu3 %v918_v2  ;;  %v1685_v33 = vpop.f32.mrf.mxu0 }
 0x187   :  { %v655_v53 = vpop.f32.mrf.mxu1 }
 0x188   :  { %v656_v61 = vadd.f32 %v655_v53, %v2935_v46 }
 0x189   :  { %v3083_v14 = vpop.f32.mrf.mxu2 }
 0x18a   :  { %2144 = vmatmul.msk.bf16.gmra.mxu1 %vm339_vm1, %v2669_v31  ;;  %v808_v19 = vmax.f32 %v656_v61, 0.0 }
 0x18b   :  { %1724 = vmatmul.bf16.gmra.mxu0 %v2390_v62 }
 0x18e   :  { %v1687_v53 = vpop.f32.mrf.mxu0 }
 0x18f   :  { %v657_v6 = vpop.f32.mrf.mxu1 }
 0x190   :  { %v658_v0 = vadd.f32 %v657_v6, %v2935_v46  ;;  %v3117_v6 = vld [vmem:[%s3752_s6] ss:$0 sm:$0xff] }
 0x191   :  { %v3094_v15 = vpop.f32.mrf.mxu2 }
 0x192   :  { %v810_v57 = vmax.f32 %v658_v0, 0.0 }
 0x194   :  { %v920_v17 = vpack.c.bf16 %v810_v57, %v808_v19 }
 0x196   :  { %1185 = vmatmul.bf16.gmra.mxu2 %v2907_v59  ;;  %1308 = vmatmul.bf16.gmra.mxu3 %v920_v17 }
 0x197   :  { %v660_v31 = vpop.f32.mrf.mxu1 }
 0x198   :  { %v661_v43 = vadd.f32 %v660_v31, %v2935_v46  ;;  %v1690_v0 = vpop.f32.mrf.mxu0 }
 0x199   :  { %v3097_v13 = vpop.f32.mrf.mxu2 }
 0x19a   :  { %2145 = vmatmul.msk.bf16.gmra.mxu1 %vm339_vm1, %v2696_v37  ;;  %v812_v59 = vmax.f32 %v661_v43, 0.0 }
 0x19f   :  { %v662_v45 = vpop.f32.mrf.mxu1 }
 0x1a0   :  { %v663_v2 = vadd.f32 %v662_v45, %v2935_v46 }
 0x1a1   :  { %v3106_v24 = vpop.f32.mrf.mxu2 }
 0x1a2   :  { %v814_v49 = vmax.f32 %v663_v2, 0.0  ;;  %v1692_v2 = vpop.f32.mrf.mxu0 }
 0x1a4   :  { %v922_v41 = vpack.c.bf16 %v814_v49, %v812_v59 }
 0x1a6   :  { %1190 = vmatmul.bf16.gmra.mxu2 %v2926_v38  ;;  %1313 = vmatmul.bf16.gmra.mxu3 %v922_v41  ;;  %v2391_v38 = vld [vmem:[%s3751_s0 + $0x50] sm:$0xff] }
 0x1a7   :  { %v665_v37 = vpop.f32.mrf.mxu1  ;;  %1729 = vmatmul.bf16.gmra.mxu0 %v2391_v38 }
 0x1a8   :  { %v666_v57 = vadd.f32 %v665_v37, %v2935_v46 }
 0x1a9   :  { %v3109_v39 = vpop.f32.mrf.mxu2  ;;  %v1274_v20 = vpop.f32.mrf.mxu3 }
 0x1aa   :  { %v1275_v61 = vadd.f32 %v1274_v20, %v2932_v30  ;;  %2146 = vmatmul.msk.bf16.gmra.mxu1 %vm339_vm1, %v2714_v40 }
 0x1ac   :  { %v1681_v19 = vadd.f32 %v1680_v10, %v1275_v61  ;;  %v816_v10 = vmax.f32 %v666_v57, 0.0 }
 0x1ae   :  { %v1843_v17 = vadd.f32 %v3117_v6, %v1681_v19 }
 0x1af   :  { %v667_v30 = vpop.f32.mrf.mxu1 }
 0x1b0   :  { %1906 = vst [vmem:[%s3753_s7] sm:$0xff] %v1843_v17  ;;  %v668_v40 = vadd.f32 %v667_v30, %v2935_v46 }
 0x1b1   :  { %v3128_v31 = vpop.f32.mrf.mxu2  ;;  %v1276_v62 = vpop.f32.mrf.mxu3 }
 0x1b2   :  { %v818_v43 = vmax.f32 %v668_v40, 0.0  ;;  %v1277_v45 = vadd.f32 %v1276_v62, %v2946_v23  ;;  %v1695_v23 = vpop.f32.mrf.mxu0 }
 0x1b4   :  { %v1683_v59 = vadd.f32 %v1682_v25, %v1277_v45  ;;  %v924_v49 = vpack.c.bf16 %v818_v43, %v816_v10 }
 0x1b6   :  { %v1844_v41 = vadd.f32 %v3117_v6, %v1683_v59  ;;  %1195 = vmatmul.bf16.gmra.mxu2 %v2943_v58  ;;  %1318 = vmatmul.bf16.gmra.mxu3 %v924_v49  ;;  %v2392_v58 = vld [vmem:[%s3751_s0 + $0x58] sm:$0xff] }
 0x1b7   :  { %v670_v37 = vpop.f32.mrf.mxu1  ;;  %1734 = vmatmul.bf16.gmra.mxu0 %v2392_v58 }
 0x1b8   :  { %1907 = vst [vmem:[%s3753_s7 + $0x8] sm:$0xff] %v1844_v41  ;;  %v671_v38 = vadd.f32 %v670_v37, %v2935_v46 }
 0x1b9   :  { %v3136_v20 = vpop.f32.mrf.mxu2  ;;  %v1279_v61 = vpop.f32.mrf.mxu3 }
 0x1ba   :  { %v1280_v19 = vadd.f32 %v1279_v61, %v2955_v5  ;;  %2147 = vmatmul.msk.bf16.gmra.mxu1 %vm339_vm1, %v2548_v9  ;;  %v1697_v10 = vpop.f32.mrf.mxu0 }
 0x1bc   :  { %v1686_v25 = vadd.f32 %v1685_v33, %v1280_v19  ;;  %v820_v33 = vmax.f32 %v671_v38, 0.0 }
 0x1be   :  { %v1845_v57 = vadd.f32 %v3117_v6, %v1686_v25 }
 0x1bf   :  { %v672_v17 = vpop.f32.mrf.mxu1 }
 0x1c0   :  { %1908 = vst [vmem:[%s3753_s7 + $0x10] sm:$0xff] %v1845_v57  ;;  %v673_v5 = vadd.f32 %v672_v17, %v2935_v46 }
 0x1c1   :  { %v3150_v30 = vpop.f32.mrf.mxu2  ;;  %v1281_v9 = vpop.f32.mrf.mxu3 }
 0x1c2   :  { %v822_v40 = vmax.f32 %v673_v5, 0.0  ;;  %v1282_v62 = vadd.f32 %v1281_v9, %v2968_v27  ;;  %v2479_v27 = vld [vmem:[%s3747_s1 + $0x98] sm:$0xff] }
 0x1c4   :  { %v1688_v43 = vadd.f32 %v1687_v53, %v1282_v62  ;;  %v926_v45 = vpack.c.bf16 %v822_v40, %v820_v33  ;;  %v1700_v53 = vpop.f32.mrf.mxu0 }
 0x1c6   :  { %v1846_v59 = vadd.f32 %v3117_v6, %v1688_v43  ;;  %1200 = vmatmul.bf16.gmra.mxu2 %v2965_v22  ;;  %1323 = vmatmul.bf16.gmra.mxu3 %v926_v45  ;;  %v2393_v22 = vld [vmem:[%s3751_s0 + $0x60] sm:$0xff] }
 0x1c7   :  { %v675_v49 = vpop.f32.mrf.mxu1  ;;  %1739 = vmatmul.bf16.gmra.mxu0 %v2393_v22 }
 0x1c8   :  { %1909 = vst [vmem:[%s3753_s7 + $0x18] sm:$0xff] %v1846_v59  ;;  %v676_v25 = vadd.f32 %v675_v49, %v2935_v46 }
 0x1c9   :  { %v3158_v41 = vpop.f32.mrf.mxu2  ;;  %v1284_v37 = vpop.f32.mrf.mxu3 }
 0x1ca   :  { %v1285_v61 = vadd.f32 %v1284_v37, %v2977_v4  ;;  %2148 = vmatmul.msk.bf16.gmra.mxu1 %vm339_vm1, %v2479_v27 }
 0x1cc   :  { %v1691_v19 = vadd.f32 %v1690_v0, %v1285_v61  ;;  %v824_v0 = vmax.f32 %v676_v25, 0.0  ;;  %v1702_v33 = vpop.f32.mrf.mxu0 }
 0x1ce   :  { %v1847_v58 = vadd.f32 %v3117_v6, %v1691_v19 }
 0x1cf   :  { %v677_v38 = vpop.f32.mrf.mxu1 }
 0x1d0   :  { %1910 = vst [vmem:[%s3753_s7 + $0x20] sm:$0xff] %v1847_v58  ;;  %v678_v4 = vadd.f32 %v677_v38, %v2935_v46 }
 0x1d1   :  { %v3174_v57 = vpop.f32.mrf.mxu2  ;;  %v1286_v17 = vpop.f32.mrf.mxu3 }
 0x1d2   :  { %v826_v5 = vmax.f32 %v678_v4, 0.0  ;;  %v1287_v9 = vadd.f32 %v1286_v17, %v2990_v28  ;;  %v2480_v28 = vld [vmem:[%s3747_s1 + $0xa0] sm:$0xff] }
 0x1d4   :  { %v1693_v40 = vadd.f32 %v1692_v2, %v1287_v9  ;;  %v928_v62 = vpack.c.bf16 %v826_v5, %v824_v0  ;;  %v1705_v2 = vpop.f32.mrf.mxu0 }
 0x1d6   :  { %v1848_v43 = vadd.f32 %v3117_v6, %v1693_v40  ;;  %1205 = vmatmul.bf16.gmra.mxu2 %v2987_v52  ;;  %1328 = vmatmul.bf16.gmra.mxu3 %v928_v62  ;;  %v2394_v52 = vld [vmem:[%s3751_s0 + $0x68] sm:$0xff] }
 0x1d7   :  { %v680_v45 = vpop.f32.mrf.mxu1  ;;  %1744 = vmatmul.bf16.gmra.mxu0 %v2394_v52 }
 0x1d8   :  { %1911 = vst [vmem:[%s3753_s7 + $0x28] sm:$0xff] %v1848_v43  ;;  %v681_v27 = vadd.f32 %v680_v45, %v2935_v46 }
 0x1d9   :  { %v3182_v59 = vpop.f32.mrf.mxu2  ;;  %v1289_v49 = vpop.f32.mrf.mxu3 }
 0x1da   :  { %v1290_v37 = vadd.f32 %v1289_v49, %v2999_v1  ;;  %2149 = vmatmul.msk.bf16.gmra.mxu1 %vm339_vm1, %v2480_v28 }
 0x1dc   :  { %v1696_v61 = vadd.f32 %v1695_v23, %v1290_v37  ;;  %v828_v23 = vmax.f32 %v681_v27, 0.0  ;;  %v1707_v17 = vpop.f32.mrf.mxu0 }
 0x1de   :  { %v1849_v19 = vadd.f32 %v3117_v6, %v1696_v61 }
 0x1df   :  { %v682_v22 = vpop.f32.mrf.mxu1 }
 0x1e0   :  { %1912 = vst [vmem:[%s3753_s7 + $0x30] sm:$0xff] %v1849_v19  ;;  %v683_v1 = vadd.f32 %v682_v22, %v2935_v46 }
 0x1e1   :  { %v3198_v25 = vpop.f32.mrf.mxu2  ;;  %v1291_v58 = vpop.f32.mrf.mxu3 }
 0x1e2   :  { %v830_v38 = vmax.f32 %v683_v1, 0.0  ;;  %v1292_v4 = vadd.f32 %v1291_v58, %v3012_v42  ;;  %v2481_v42 = vld [vmem:[%s3747_s1 + $0xa8] sm:$0xff] }
 0x1e4   :  { %v1698_v0 = vadd.f32 %v1697_v10, %v1292_v4  ;;  %v930_v5 = vpack.c.bf16 %v830_v38, %v828_v23  ;;  %v1710_v10 = vpop.f32.mrf.mxu0 }
 0x1e6   :  { %v1850_v9 = vadd.f32 %v3117_v6, %v1698_v0  ;;  %1210 = vmatmul.bf16.gmra.mxu2 %v3009_v18  ;;  %1333 = vmatmul.bf16.gmra.mxu3 %v930_v5  ;;  %v2395_v18 = vld [vmem:[%s3751_s0 + $0x70] sm:$0xff] }
 0x1e7   :  { %v685_v40 = vpop.f32.mrf.mxu1  ;;  %1749 = vmatmul.bf16.gmra.mxu0 %v2395_v18 }
 0x1e8   :  { %1913 = vst [vmem:[%s3753_s7 + $0x38] sm:$0xff] %v1850_v9  ;;  %v686_v37 = vadd.f32 %v685_v40, %v2935_v46 }
 0x1e9   :  { %v3206_v62 = vpop.f32.mrf.mxu2  ;;  %v1294_v43 = vpop.f32.mrf.mxu3 }
 0x1ea   :  { %v1295_v45 = vadd.f32 %v1294_v43, %v3021_v56  ;;  %2150 = vmatmul.msk.bf16.gmra.mxu1 %vm339_vm1, %v2481_v42 }
 0x1ec   :  { %v1701_v49 = vadd.f32 %v1700_v53, %v1295_v45  ;;  %v832_v53 = vmax.f32 %v686_v37, 0.0  ;;  %v1712_v1 = vpop.f32.mrf.mxu0 }
 0x1ee   :  { %v1851_v28 = vadd.f32 %v3117_v6, %v1701_v49 }
 0x1ef   :  { %v687_v61 = vpop.f32.mrf.mxu1 }
 0x1f0   :  { %1914 = vst [vmem:[%s3753_s7 + $0x40] sm:$0xff] %v1851_v28  ;;  %v688_v56 = vadd.f32 %v687_v61, %v2935_v46 }
 0x1f1   :  { %v3222_v52 = vpop.f32.mrf.mxu2  ;;  %v1296_v27 = vpop.f32.mrf.mxu3 }
 0x1f2   :  { %v834_v19 = vmax.f32 %v688_v56, 0.0  ;;  %v1297_v22 = vadd.f32 %v1296_v27, %v3034_v11  ;;  %v2482_v11 = vld [vmem:[%s3747_s1 + $0xb0] sm:$0xff] }
 0x1f4   :  { %v1703_v58 = vadd.f32 %v1702_v33, %v1297_v22  ;;  %v932_v23 = vpack.c.bf16 %v834_v19, %v832_v53  ;;  %v1715_v33 = vpop.f32.mrf.mxu0 }
 0x1f6   :  { %v1852_v38 = vadd.f32 %v3117_v6, %v1703_v58  ;;  %1215 = vmatmul.bf16.gmra.mxu2 %v3031_v54  ;;  %1338 = vmatmul.bf16.gmra.mxu3 %v932_v23  ;;  %v2396_v54 = vld [vmem:[%s3751_s0 + $0x78] sm:$0xff] }
 0x1f7   :  { %v690_v4 = vpop.f32.mrf.mxu1  ;;  %1754 = vmatmul.bf16.gmra.mxu0 %v2396_v54 }
 0x1f8   :  { %1915 = vst [vmem:[%s3753_s7 + $0x48] sm:$0xff] %v1852_v38  ;;  %v691_v43 = vadd.f32 %v690_v4, %v2935_v46 }
 0x1f9   :  { %v3230_v0 = vpop.f32.mrf.mxu2  ;;  %v1299_v5 = vpop.f32.mrf.mxu3 }
 0x1fa   :  { %v1300_v9 = vadd.f32 %v1299_v5, %v3043_v51  ;;  %2151 = vmatmul.msk.bf16.gmra.mxu1 %vm339_vm1, %v2482_v11 }
 0x1fc   :  { %v1706_v40 = vadd.f32 %v1705_v2, %v1300_v9  ;;  %v836_v2 = vmax.f32 %v691_v43, 0.0  ;;  %v1717_v61 = vpop.f32.mrf.mxu0 }
 0x1fe   :  { %v1853_v45 = vadd.f32 %v3117_v6, %v1706_v40 }
 0x1ff   :  { %v692_v42 = vpop.f32.mrf.mxu1 }
 0x200   :  { %1916 = vst [vmem:[%s3753_s7 + $0x50] sm:$0xff] %v1853_v45  ;;  %v693_v51 = vadd.f32 %v692_v42, %v2935_v46 }
 0x201   :  { %v3246_v49 = vpop.f32.mrf.mxu2  ;;  %v1301_v18 = vpop.f32.mrf.mxu3 }
 0x202   :  { %v838_v37 = vmax.f32 %v693_v51, 0.0  ;;  %v1302_v28 = vadd.f32 %v1301_v18, %v3056_v50  ;;  %v2483_v50 = vld [vmem:[%s3747_s1 + $0xb8] sm:$0xff] }
 0x204   :  { %v1708_v56 = vadd.f32 %v1707_v17, %v1302_v28  ;;  %v934_v27 = vpack.c.bf16 %v838_v37, %v836_v2  ;;  %v1720_v17 = vpop.f32.mrf.mxu0 }
 0x206   :  { %v1854_v53 = vadd.f32 %v3117_v6, %v1708_v56  ;;  %1220 = vmatmul.bf16.gmra.mxu2 %v3053_v16  ;;  %1343 = vmatmul.bf16.gmra.mxu3 %v934_v27  ;;  %v2397_v16 = vld [vmem:[%s3751_s0 + $0x80] sm:$0xff] }
 0x207   :  { %v695_v19 = vpop.f32.mrf.mxu1  ;;  %1759 = vmatmul.bf16.gmra.mxu0 %v2397_v16 }
 0x208   :  { %1917 = vst [vmem:[%s3753_s7 + $0x58] sm:$0xff] %v1854_v53  ;;  %v696_v4 = vadd.f32 %v695_v19, %v2935_v46 }
 0x209   :  { %v3254_v22 = vpop.f32.mrf.mxu2  ;;  %v1304_v58 = vpop.f32.mrf.mxu3 }
 0x20a   :  { %v1305_v23 = vadd.f32 %v1304_v58, %v3065_v55  ;;  %2152 = vmatmul.msk.bf16.gmra.mxu1 %vm339_vm1, %v2483_v50 }
 0x20c   :  { %v1711_v38 = vadd.f32 %v1710_v10, %v1305_v23  ;;  %v840_v10 = vmax.f32 %v696_v4, 0.0  ;;  %v1722_v45 = vpop.f32.mrf.mxu0 }
 0x20e   :  { %v1855_v5 = vadd.f32 %v3117_v6, %v1711_v38 }
 0x20f   :  { %v697_v9 = vpop.f32.mrf.mxu1 }
 0x210   :  { %1918 = vst [vmem:[%s3753_s7 + $0x60] sm:$0xff] %v1855_v5  ;;  %v698_v55 = vadd.f32 %v697_v9, %v2935_v46 }
 0x211   :  { %v3270_v11 = vpop.f32.mrf.mxu2  ;;  %v1306_v40 = vpop.f32.mrf.mxu3 }
 0x212   :  { %v842_v54 = vmax.f32 %v698_v55, 0.0  ;;  %v1307_v43 = vadd.f32 %v1306_v40, %v3076_v35  ;;  %v2484_v35 = vld [vmem:[%s3747_s1 + $0xc0] sm:$0xff] }
 0x214   :  { %v1713_v42 = vadd.f32 %v1712_v1, %v1307_v43  ;;  %v936_v51 = vpack.c.bf16 %v842_v54, %v840_v10  ;;  %v1725_v1 = vpop.f32.mrf.mxu0 }
 0x216   :  { %v1856_v18 = vadd.f32 %v3117_v6, %v1713_v42  ;;  %1225 = vmatmul.bf16.gmra.mxu2 %v3073_v12  ;;  %1348 = vmatmul.bf16.gmra.mxu3 %v936_v51  ;;  %v2398_v12 = vld [vmem:[%s3751_s0 + $0x88] sm:$0xff]  ;;  %v585_v42 = vadd.f32 %v2957_v8, %v2722_v44 }
 0x217   :  { %v700_v2 = vpop.f32.mrf.mxu1  ;;  %1764 = vmatmul.bf16.gmra.mxu0 %v2398_v12 }
 0x218   :  { %1919 = vst [vmem:[%s3753_s7 + $0x68] sm:$0xff] %v1856_v18  ;;  %v701_v53 = vadd.f32 %v700_v2, %v2935_v46  ;;  %v2399_v18 = vld [vmem:[%s3751_s0 + $0x90] sm:$0xff] }
 0x219   :  { %v3278_v37 = vpop.f32.mrf.mxu2  ;;  %v1309_v28 = vpop.f32.mrf.mxu3 }
 0x21a   :  { %v1310_v56 = vadd.f32 %v1309_v28, %v3083_v14  ;;  %2153 = vmatmul.msk.bf16.gmra.mxu1 %vm339_vm1, %v2484_v35  ;;  %v885_v35 = vmax.f32 %v585_v42, 0.0 }
 0x21c   :  { %v1716_v27 = vadd.f32 %v1715_v33, %v1310_v56  ;;  %v844_v33 = vmax.f32 %v701_v53, 0.0  ;;  %v3297_v4 = vpop.f32.mrf.mxu0 }
 0x21e   :  { %v1857_v19 = vadd.f32 %v3117_v6, %v1716_v27 }
 0x21f   :  { %v702_v58 = vpop.f32.mrf.mxu1 }
 0x220   :  { %1920 = vst [vmem:[%s3753_s7 + $0x70] sm:$0xff] %v1857_v19  ;;  %v703_v14 = vadd.f32 %v702_v58, %v2935_v46 }
 0x221   :  { %v3294_v23 = vpop.f32.mrf.mxu2  ;;  %v1311_v50 = vpop.f32.mrf.mxu3 }
 0x222   :  { %v846_v38 = vmax.f32 %v703_v14, 0.0  ;;  %v1312_v16 = vadd.f32 %v1311_v50, %v3094_v15  ;;  %v2485_v15 = vld [vmem:[%s3747_s1 + $0xc8] sm:$0xff] }
 0x224   :  { %v1718_v5 = vadd.f32 %v1717_v61, %v1312_v16  ;;  %v938_v9 = vpack.c.bf16 %v846_v38, %v844_v33  ;;  %v3311_v61 = vpop.f32.mrf.mxu0 }
 0x226   :  { %v1858_v55 = vadd.f32 %v3117_v6, %v1718_v5  ;;  %1230 = vmatmul.bf16.gmra.mxu2 %v3091_v3  ;;  %1353 = vmatmul.bf16.gmra.mxu3 %v938_v9  ;;  %v583_v3 = vadd.f32 %v2948_v60, %v2722_v44 }
 0x227   :  { %v705_v40 = vpop.f32.mrf.mxu1  ;;  %1769 = vmatmul.bf16.gmra.mxu0 %v2399_v18 }
 0x228   :  { %1921 = vst [vmem:[%s3753_s7 + $0x78] sm:$0xff] %v1858_v55  ;;  %v883_v56 = vmax.f32 %v583_v3, 0.0  ;;  %v588_v55 = vadd.f32 %v2970_v32, %v2722_v44 }
 0x229   :  { %v3304_v10 = vpop.f32.mrf.mxu2  ;;  %v1314_v54 = vpop.f32.mrf.mxu3 }
 0x22a   :  { %v1315_v43 = vadd.f32 %v1314_v54, %v3097_v13  ;;  %2154 = vmatmul.msk.bf16.gmra.mxu1 %vm339_vm1, %v2485_v15  ;;  %v706_v13 = vadd.f32 %v705_v40, %v2935_v46  ;;  %v957_v14 = vpack.c.bf16 %v885_v35, %v883_v56  ;;  %v590_v40 = vadd.f32 %v2979_v47, %v2722_v44 }
 0x22b   :  { %v887_v42 = vmax.f32 %v588_v55, 0.0 }
 0x22c   :  { %v1721_v51 = vadd.f32 %v1720_v17, %v1315_v43  ;;  %v848_v27 = vmax.f32 %v706_v13, 0.0  ;;  %v3329_v19 = vpop.f32.mrf.mxu0  ;;  %v2400_v43 = vld [vmem:[%s3751_s0 + $0x98] sm:$0xff] }
 0x22e   :  { %v1859_v2 = vadd.f32 %v3117_v6, %v1721_v51  ;;  %v889_v51 = vmax.f32 %v590_v40, 0.0 }
 0x22f   :  { %v707_v28 = vpop.f32.mrf.mxu1 }
 0x230   :  { %1922 = vst [vmem:[%s3753_s7 + $0x80] sm:$0xff] %v1859_v2  ;;  %v708_v60 = vadd.f32 %v707_v28, %v2935_v46  ;;  %v959_v35 = vpack.c.bf16 %v889_v51, %v887_v42 }
 0x231   :  { %v3326_v8 = vpop.f32.mrf.mxu2  ;;  %v1316_v17 = vpop.f32.mrf.mxu3 }
 0x232   :  { %v850_v12 = vmax.f32 %v708_v60, 0.0  ;;  %v1317_v53 = vadd.f32 %v1316_v17, %v3106_v24  ;;  %v2486_v24 = vld [vmem:[%s3747_s1 + $0xd0] sm:$0xff] }
 0x234   :  { %v1723_v58 = vadd.f32 %v1722_v45, %v1317_v53  ;;  %v940_v50 = vpack.c.bf16 %v850_v12, %v848_v27  ;;  %v3342_v45 = vpop.f32.mrf.mxu0 }
 0x236   :  { %v1860_v33 = vadd.f32 %v3117_v6, %v1723_v58  ;;  %1235 = vmatmul.bf16.gmra.mxu2 %v957_v14  ;;  %1358 = vmatmul.bf16.gmra.mxu3 %v940_v50  ;;  %v593_v14 = vadd.f32 %v2992_v63, %v2722_v44  ;;  %v595_v50 = vadd.f32 %v3001_v36, %v2722_v44 }
 0x237   :  { %v710_v38 = vpop.f32.mrf.mxu1  ;;  %1774 = vmatmul.bf16.gmra.mxu0 %v2400_v43 }
 0x238   :  { %1923 = vst [vmem:[%s3753_s7 + $0x88] sm:$0xff] %v1860_v33  ;;  %v893_v55 = vmax.f32 %v595_v50, 0.0 }
 0x239   :  { %v3335_v16 = vpop.f32.mrf.mxu2  ;;  %v1319_v5 = vpop.f32.mrf.mxu3 }
 0x23a   :  { %v1320_v9 = vadd.f32 %v1319_v5, %v3109_v39  ;;  %2155 = vmatmul.msk.bf16.gmra.mxu1 %vm339_vm1, %v2486_v24  ;;  %v711_v39 = vadd.f32 %v710_v38, %v2935_v46  ;;  %v891_v24 = vmax.f32 %v593_v14, 0.0 }
 0x23c   :  { %v1726_v54 = vadd.f32 %v1725_v1, %v1320_v9  ;;  %v852_v18 = vmax.f32 %v711_v39, 0.0  ;;  %v3360_v28 = vpop.f32.mrf.mxu0 }
 0x23e   :  { %v1861_v15 = vadd.f32 %v3117_v6, %v1726_v54 }
 0x23f   :  { %v712_v3 = vpop.f32.mrf.mxu1 }
 0x240   :  { %1924 = vst [vmem:[%s3753_s7 + $0x90] sm:$0xff] %v1861_v15  ;;  %v713_v32 = vadd.f32 %v712_v3, %v2935_v46  ;;  %v961_v3 = vpack.c.bf16 %v893_v55, %v891_v24 }
 0x241   :  { %v3357_v47 = vpop.f32.mrf.mxu2  ;;  %v1321_v1 = vpop.f32.mrf.mxu3 }
 0x242   :  { %v854_v13 = vmax.f32 %v713_v32, 0.0  ;;  %v1322_v2 = vadd.f32 %v1321_v1, %v3128_v31 }
 0x244   :  { %v1728_v56 = vadd.f32 %v3297_v4, %v1322_v2  ;;  %v942_v60 = vpack.c.bf16 %v854_v13, %v852_v18  ;;  %v2487_v4 = vld [vmem:[%s3747_s1 + $0xd8] sm:$0xff]  ;;  %v3374_v58 = vpop.f32.mrf.mxu0  ;;  %v598_v2 = vadd.f32 %v3014_v7, %v2722_v44 }
 0x246   :  { %v1862_v17 = vadd.f32 %v3117_v6, %v1728_v56  ;;  %1240 = vmatmul.bf16.gmra.mxu2 %v959_v35  ;;  %1363 = vmatmul.bf16.gmra.mxu3 %v942_v60  ;;  %v600_v56 = vadd.f32 %v3023_v21, %v2722_v44 }
 0x247   :  { %v715_v27 = vpop.f32.mrf.mxu1 }
 0x248   :  { %1925 = vst [vmem:[%s3753_s7 + $0x98] sm:$0xff] %v1862_v17  ;;  %v716_v38 = vadd.f32 %v715_v27, %v2935_v46 }
 0x249   :  { %v3367_v12 = vpop.f32.mrf.mxu2  ;;  %v1324_v53 = vpop.f32.mrf.mxu3 }
 0x24a   :  { %v1325_v31 = vadd.f32 %v1324_v53, %v3136_v20  ;;  %2156 = vmatmul.msk.bf16.gmra.mxu1 %vm339_vm1, %v2487_v4  ;;  %v2401_v20 = vld [vmem:[%s3751_s0 + $0xa0] sm:$0xff]  ;;  %v856_v40 = vmax.f32 %v716_v38, 0.0  ;;  %v895_v53 = vmax.f32 %v598_v2, 0.0 }
 0x24b   :  { %1779 = vmatmul.bf16.gmra.mxu0 %v2401_v20 }
 0x24c   :  { %v1731_v33 = vadd.f32 %v3311_v61, %v1325_v31  ;;  %v3393_v39 = vpop.f32.mrf.mxu0  ;;  %v897_v31 = vmax.f32 %v600_v56, 0.0 }
 0x24e   :  { %v1863_v5 = vadd.f32 %v3117_v6, %v1731_v33 }
 0x24f   :  { %v717_v9 = vpop.f32.mrf.mxu1 }
 0x250   :  { %1926 = vst [vmem:[%s3753_s7 + $0xa0] sm:$0xff] %v1863_v5  ;;  %v718_v63 = vadd.f32 %v717_v9, %v2935_v46  ;;  %v963_v5 = vpack.c.bf16 %v897_v31, %v895_v53 }
 0x251   :  { %v3390_v36 = vpop.f32.mrf.mxu2  ;;  %v1326_v61 = vpop.f32.mrf.mxu3 }
 0x252   :  { %v858_v54 = vmax.f32 %v718_v63, 0.0  ;;  %v1327_v43 = vadd.f32 %v1326_v61, %v3150_v30  ;;  %v2489_v61 = vld [vmem:[%s3747_s1 + $0xe8] sm:$0xff] }
 0x254   :  { %v1733_v15 = vadd.f32 %v3329_v19, %v1327_v43  ;;  %v944_v42 = vpack.c.bf16 %v858_v54, %v856_v40  ;;  %v2488_v19 = vld [vmem:[%s3747_s1 + $0xe0] sm:$0xff]  ;;  %v3407_v13 = vpop.f32.mrf.mxu0  ;;  %v603_v40 = vadd.f32 %v3036_v29, %v2722_v44  ;;  %v605_v54 = vadd.f32 %v3045_v26, %v2722_v44 }
 0x256   :  { %v1864_v51 = vadd.f32 %v3117_v6, %v1733_v15  ;;  %1245 = vmatmul.bf16.gmra.mxu2 %v961_v3  ;;  %1368 = vmatmul.bf16.gmra.mxu3 %v944_v42  ;;  %v2403_v15 = vld [vmem:[%s3751_s0 + $0xb0] sm:$0xff] }
 0x257   :  { %v720_v32 = vpop.f32.mrf.mxu1 }
 0x258   :  { %1927 = vst [vmem:[%s3753_s7 + $0xa8] sm:$0xff] %v1864_v51  ;;  %v721_v60 = vadd.f32 %v720_v32, %v2935_v46  ;;  %v899_v51 = vmax.f32 %v603_v40, 0.0  ;;  %v901_v32 = vmax.f32 %v605_v54, 0.0 }
 0x259   :  { %v3400_v1 = vpop.f32.mrf.mxu2  ;;  %v1329_v18 = vpop.f32.mrf.mxu3 }
 0x25a   :  { %v1330_v30 = vadd.f32 %v1329_v18, %v3158_v41  ;;  %2157 = vmatmul.msk.bf16.gmra.mxu1 %vm339_vm1, %v2488_v19  ;;  %v2402_v41 = vld [vmem:[%s3751_s0 + $0xa8] sm:$0xff]  ;;  %v860_v4 = vmax.f32 %v721_v60, 0.0 }
 0x25b   :  { %1784 = vmatmul.bf16.gmra.mxu0 %v2402_v41  ;;  %v965_v41 = vpack.c.bf16 %v901_v32, %v899_v51 }
 0x25c   :  { %v1736_v35 = vadd.f32 %v3342_v45, %v1330_v30  ;;  %v3426_v33 = vpop.f32.mrf.mxu0 }
 0x25e   :  { %v1865_v17 = vadd.f32 %v3117_v6, %v1736_v35 }
 0x25f   :  { %v722_v27 = vpop.f32.mrf.mxu1 }
 0x260   :  { %1928 = vst [vmem:[%s3753_s7 + $0xb0] sm:$0xff] %v1865_v17  ;;  %v723_v7 = vadd.f32 %v722_v27, %v2935_v46 }
 0x261   :  { %v3423_v21 = vpop.f32.mrf.mxu2  ;;  %v1331_v45 = vpop.f32.mrf.mxu3 }
 0x262   :  { %v862_v14 = vmax.f32 %v723_v7, 0.0  ;;  %v1332_v50 = vadd.f32 %v1331_v45, %v3174_v57  ;;  %v608_v7 = vadd.f32 %v3058_v34, %v2722_v44 }
 0x264   :  { %v946_v20 = vpack.c.bf16 %v862_v14, %v860_v4  ;;  %v1738_v38 = vadd.f32 %v3360_v28, %v1332_v50  ;;  %v1750_v28 = vpop.f32.mrf.mxu0  ;;  %v2404_v4 = vld [vmem:[%s3751_s0 + $0xb8] sm:$0xff] }
 0x266   :  { %v1866_v9 = vadd.f32 %v3117_v6, %v1738_v38  ;;  %1250 = vmatmul.bf16.gmra.mxu2 %v963_v5  ;;  %1373 = vmatmul.bf16.gmra.mxu3 %v946_v20  ;;  %v903_v20 = vmax.f32 %v608_v7, 0.0 }
 0x267   :  { %v725_v24 = vpop.f32.mrf.mxu1 }
 0x268   :  { %1929 = vst [vmem:[%s3753_s7 + $0xb8] sm:$0xff] %v1866_v9 }
 0x269   :  { %v3433_v55 = vpop.f32.mrf.mxu2  ;;  %v1334_v63 = vpop.f32.mrf.mxu3 }
 0x26a   :  { %v1335_v57 = vadd.f32 %v1334_v63, %v3182_v59  ;;  %2158 = vmatmul.msk.bf16.gmra.mxu1 %vm339_vm1, %v2489_v61  ;;  %v726_v59 = vadd.f32 %v725_v24, %v2935_v46  ;;  %v967_v63 = vpack.c.bf16 %v903_v20, %v903_v20 }
 0x26b   :  { %1789 = vmatmul.bf16.gmra.mxu0 %v2403_v15 }
 0x26c   :  { %v1741_v43 = vadd.f32 %v3374_v58, %v1335_v57  ;;  %v864_v18 = vmax.f32 %v726_v59, 0.0  ;;  %v1752_v2 = vpop.f32.mrf.mxu0 }
 0x26e   :  { %v1867_v3 = vadd.f32 %v3117_v6, %v1741_v43 }
 0x26f   :  { %v727_v42 = vpop.f32.mrf.mxu1 }
 0x270   :  { %1930 = vst [vmem:[%s3753_s7 + $0xc0] sm:$0xff] %v1867_v3  ;;  %v728_v29 = vadd.f32 %v727_v42, %v2935_v46 }
 0x271   :  { %v3454_v26 = vpop.f32.mrf.mxu2  ;;  %v1336_v58 = vpop.f32.mrf.mxu3 }
 0x272   :  { %v866_v30 = vmax.f32 %v728_v29, 0.0  ;;  %v1337_v19 = vadd.f32 %v1336_v58, %v3198_v25  ;;  %v2490_v25 = vld [vmem:[%s3747_s1 + $0xf0] sm:$0xff] }
 0x274   :  { %v948_v56 = vpack.c.bf16 %v866_v30, %v864_v18  ;;  %v1743_v35 = vadd.f32 %v3393_v39, %v1337_v19  ;;  %v1755_v39 = vpop.f32.mrf.mxu0 }
 0x276   :  { %v1868_v60 = vadd.f32 %v3117_v6, %v1743_v35  ;;  %1255 = vmatmul.bf16.gmra.mxu2 %v965_v41  ;;  %1378 = vmatmul.bf16.gmra.mxu3 %v948_v56 }
 0x277   :  { %v730_v17 = vpop.f32.mrf.mxu1 }
 0x278   :  { %1931 = vst [vmem:[%s3753_s7 + $0xc8] sm:$0xff] %v1868_v60  ;;  %v731_v14 = vadd.f32 %v730_v17, %v2935_v46 }
 0x279   :  { %v3462_v27 = vpop.f32.mrf.mxu2  ;;  %v1339_v53 = vpop.f32.mrf.mxu3 }
 0x27a   :  { %v1340_v31 = vadd.f32 %v1339_v53, %v3206_v62  ;;  %2159 = vmatmul.msk.bf16.gmra.mxu1 %vm339_vm1, %v2490_v25 }
 0x27b   :  { %1794 = vmatmul.bf16.gmra.mxu0 %v2404_v4 }
 0x27c   :  { %v1746_v45 = vadd.f32 %v3407_v13, %v1340_v31  ;;  %v868_v13 = vmax.f32 %v731_v14, 0.0  ;;  %v1757_v24 = vpop.f32.mrf.mxu0 }
 0x27e   :  { %v1869_v62 = vadd.f32 %v3117_v6, %v1746_v45 }
 0x27f   :  { %v732_v50 = vpop.f32.mrf.mxu1 }
 0x280   :  { %1932 = vst [vmem:[%s3753_s7 + $0xd0] sm:$0xff] %v1869_v62  ;;  %v733_v38 = vadd.f32 %v732_v50, %v2935_v46 }
 0x281   :  { %v3481_v44 = vpop.f32.mrf.mxu2  ;;  %v1341_v34 = vpop.f32.mrf.mxu3 }
 0x282   :  { %v870_v5 = vmax.f32 %v733_v38, 0.0  ;;  %v1342_v9 = vadd.f32 %v1341_v34, %v3222_v52 }
 0x284   :  { %v950_v57 = vpack.c.bf16 %v870_v5, %v868_v13  ;;  %v1748_v61 = vadd.f32 %v3426_v33, %v1342_v9  ;;  %v1760_v52 = vpop.f32.mrf.mxu0  ;;  %v2405_v33 = vld [vmem:[%s3751_s0 + $0xc0] sm:$0xff] }
 0x286   :  { %v1870_v40 = vadd.f32 %v3117_v6, %v1748_v61  ;;  %1260 = vmatmul.bf16.gmra.mxu2 %v967_v63  ;;  %1383 = vmatmul.bf16.gmra.mxu3 %v950_v57 }
 0x287   :  { %v735_v54 = vpop.f32.mrf.mxu1 }
 0x288   :  { %1933 = vst [vmem:[%s3753_s7 + $0xd8] sm:$0xff] %v1870_v40  ;;  %v736_v42 = vadd.f32 %v735_v54, %v2935_v46 }
 0x289   :  { %v3489_v43 = vpop.f32.mrf.mxu2  ;;  %v1344_v15 = vpop.f32.mrf.mxu3 }
 0x28a   :  { %v1345_v59 = vadd.f32 %v1344_v15, %v3230_v0  ;;  %2160 = vmatmul.msk.bf16.gmra.mxu1 %vm339_vm1, %v2875_v48 }
 0x28b   :  { %1799 = vmatmul.bf16.gmra.mxu0 %v2405_v33 }
 0x28c   :  { %v1751_v3 = vadd.f32 %v1750_v28, %v1345_v59  ;;  %v872_v28 = vmax.f32 %v736_v42, 0.0  ;;  %v1762_v30 = vpop.f32.mrf.mxu0 }
 0x28e   :  { %v1871_v51 = vadd.f32 %v3117_v6, %v1751_v3 }
 0x28f   :  { %v737_v32 = vpop.f32.mrf.mxu1 }
 0x290   :  { %1934 = vst [vmem:[%s3753_s7 + $0xe0] sm:$0xff] %v1871_v51  ;;  %v738_v0 = vadd.f32 %v737_v32, %v2935_v46 }
 0x291   :  { %v3503_v29 = vpop.f32.mrf.mxu2  ;;  %v1346_v48 = vpop.f32.mrf.mxu3 }
 0x292   :  { %v874_v58 = vmax.f32 %v738_v0, 0.0  ;;  %v1347_v18 = vadd.f32 %v1346_v48, %v3246_v49  ;;  %v2406_v49 = vld [vmem:[%s3751_s0 + $0xc8] sm:$0xff] }
 0x294   :  { %v952_v19 = vpack.c.bf16 %v874_v58, %v872_v28  ;;  %v1753_v56 = vadd.f32 %v1752_v2, %v1347_v18  ;;  %v1765_v31 = vpop.f32.mrf.mxu0 }
 0x296   :  { %v1872_v35 = vadd.f32 %v3117_v6, %v1753_v56  ;;  %1388 = vmatmul.bf16.gmra.mxu3 %v952_v19 }
 0x297   :  { %v740_v41 = vpop.f32.mrf.mxu1 }
 0x298   :  { %1935 = vst [vmem:[%s3753_s7 + $0xe8] sm:$0xff] %v1872_v35  ;;  %v741_v2 = vadd.f32 %v740_v41, %v2935_v46 }
 0x299   :  { %v3510_v60 = vpop.f32.mrf.mxu2  ;;  %v1349_v17 = vpop.f32.mrf.mxu3 }
 0x29a   :  { %v1350_v53 = vadd.f32 %v1349_v17, %v3254_v22 }
 0x29b   :  { %1804 = vmatmul.bf16.gmra.mxu0 %v2406_v49 }
 0x29c   :  { %v1756_v25 = vadd.f32 %v1755_v39, %v1350_v53  ;;  %v876_v39 = vmax.f32 %v741_v2, 0.0  ;;  %v1767_v20 = vpop.f32.mrf.mxu0 }
 0x29e   :  { %v1873_v7 = vadd.f32 %v3117_v6, %v1756_v25 }
 0x29f   :  { %v742_v45 = vpop.f32.mrf.mxu1 }
 0x2a0   :  { %1936 = vst [vmem:[%s3753_s7 + $0xf0] sm:$0xff] %v1873_v7  ;;  %v743_v4 = vadd.f32 %v742_v45, %v2935_v46 }
 0x2a1   :  { %v3522_v14 = vpop.f32.mrf.mxu2  ;;  %v1351_v22 = vpop.f32.mrf.mxu3 }
 0x2a2   :  { %v878_v62 = vmax.f32 %v743_v4, 0.0  ;;  %v1352_v50 = vadd.f32 %v1351_v22, %v3270_v11  ;;  %v2407_v11 = vld [vmem:[%s3751_s0 + $0xd0] sm:$0xff] }
 0x2a4   :  { %v954_v38 = vpack.c.bf16 %v878_v62, %v876_v39  ;;  %v1758_v34 = vadd.f32 %v1757_v24, %v1352_v50  ;;  %v1770_v61 = vpop.f32.mrf.mxu0 }
 0x2a6   :  { %v1874_v13 = vadd.f32 %v3117_v6, %v1758_v34  ;;  %1393 = vmatmul.bf16.gmra.mxu3 %v954_v38 }
 0x2a7   :  { %v745_v5 = vpop.f32.mrf.mxu1 }
 0x2a8   :  { %1937 = vst [vmem:[%s3753_s7 + $0xf8] sm:$0xff] %v1874_v13  ;;  %v746_v24 = vadd.f32 %v745_v5, %v2935_v46 }
 0x2a9   :  { %v3529_v9 = vpop.f32.mrf.mxu2  ;;  %v1354_v63 = vpop.f32.mrf.mxu3 }
 0x2aa   :  { %v1355_v57 = vadd.f32 %v1354_v63, %v3278_v37 }
 0x2ab   :  { %1809 = vmatmul.bf16.gmra.mxu0 %v2407_v11 }
 0x2ac   :  { %v1761_v40 = vadd.f32 %v1760_v52, %v1355_v57  ;;  %v880_v52 = vmax.f32 %v746_v24, 0.0  ;;  %v1772_v51 = vpop.f32.mrf.mxu0 }
 0x2ae   :  { %v1875_v54 = vadd.f32 %v3117_v6, %v1761_v40 }
 0x2af   :  { %v747_v15 = vpop.f32.mrf.mxu1 }
 0x2b0   :  { %1938 = vst [vmem:[%s3753_s7 + $0x100] sm:$0xff] %v1875_v54  ;;  %v748_v59 = vadd.f32 %v747_v15, %v2935_v46 }
 0x2b1   :  { %v3541_v3 = vpop.f32.mrf.mxu2  ;;  %v1356_v37 = vpop.f32.mrf.mxu3 }
 0x2b2   :  { %v882_v33 = vmax.f32 %v748_v59, 0.0  ;;  %v1357_v42 = vadd.f32 %v1356_v37, %v3294_v23  ;;  %v2408_v23 = vld [vmem:[%s3751_s0 + $0xd8] sm:$0xff] }
 0x2b4   :  { %v956_v32 = vpack.c.bf16 %v882_v33, %v880_v52  ;;  %v1763_v0 = vadd.f32 %v1762_v30, %v1357_v42  ;;  %v1775_v56 = vpop.f32.mrf.mxu0 }
 0x2b6   :  { %v1876_v48 = vadd.f32 %v3117_v6, %v1763_v0  ;;  %1398 = vmatmul.bf16.gmra.mxu3 %v956_v32 }
 0x2b7   :  { %v750_v28 = vpop.f32.mrf.mxu1 }
 0x2b8   :  { %1939 = vst [vmem:[%s3753_s7 + $0x108] sm:$0xff] %v1876_v48  ;;  %v751_v30 = vadd.f32 %v750_v28, %v2935_v46 }
 0x2b9   :  { %v3548_v58 = vpop.f32.mrf.mxu2  ;;  %v1359_v18 = vpop.f32.mrf.mxu3 }
 0x2ba   :  { %v1360_v19 = vadd.f32 %v1359_v18, %v3304_v10 }
 0x2bb   :  { %1814 = vmatmul.bf16.gmra.mxu0 %v2408_v23 }
 0x2bc   :  { %v1766_v35 = vadd.f32 %v1765_v31, %v1360_v19  ;;  %v884_v31 = vmax.f32 %v751_v30, 0.0  ;;  %v1777_v7 = vpop.f32.mrf.mxu0 }
 0x2be   :  { %v1877_v41 = vadd.f32 %v3117_v6, %v1766_v35 }
 0x2bf   :  { %v752_v17 = vpop.f32.mrf.mxu1 }
 0x2c0   :  { %1940 = vst [vmem:[%s3753_s7 + $0x110] sm:$0xff] %v1877_v41  ;;  %v753_v53 = vadd.f32 %v752_v17, %v2935_v46 }
 0x2c1   :  { %v3560_v25 = vpop.f32.mrf.mxu2  ;;  %v1361_v10 = vpop.f32.mrf.mxu3 }
 0x2c2   :  { %v886_v49 = vmax.f32 %v753_v53, 0.0  ;;  %v1362_v2 = vadd.f32 %v1361_v10, %v3326_v8  ;;  %v2409_v8 = vld [vmem:[%s3751_s0 + $0xe0] sm:$0xff] }
 0x2c4   :  { %v958_v45 = vpack.c.bf16 %v886_v49, %v884_v31  ;;  %v1768_v4 = vadd.f32 %v1767_v20, %v1362_v2 }
 0x2c6   :  { %v1878_v22 = vadd.f32 %v3117_v6, %v1768_v4  ;;  %1403 = vmatmul.bf16.gmra.mxu3 %v958_v45 }
 0x2c7   :  { %v755_v39 = vpop.f32.mrf.mxu1 }
 0x2c8   :  { %1941 = vst [vmem:[%s3753_s7 + $0x118] sm:$0xff] %v1878_v22  ;;  %v1780_v34 = vpop.f32.mrf.mxu0  ;;  %v756_v20 = vadd.f32 %v755_v39, %v2935_v46 }
 0x2c9   :  { %v3567_v62 = vpop.f32.mrf.mxu2  ;;  %v1364_v50 = vpop.f32.mrf.mxu3 }
 0x2ca   :  { %v1365_v38 = vadd.f32 %v1364_v50, %v3335_v16 }
 0x2cb   :  { %1819 = vmatmul.bf16.gmra.mxu0 %v2409_v8 }
 0x2cc   :  { %v1771_v13 = vadd.f32 %v1770_v61, %v1365_v38  ;;  %v888_v61 = vmax.f32 %v756_v20, 0.0 }
 0x2ce   :  { %v1879_v5 = vadd.f32 %v3117_v6, %v1771_v13 }
 0x2cf   :  { %v757_v63 = vpop.f32.mrf.mxu1 }
 0x2d0   :  { %1942 = vst [vmem:[%s3753_s7 + $0x120] sm:$0xff] %v1879_v5  ;;  %v758_v57 = vadd.f32 %v757_v63, %v2935_v46  ;;  %v1782_v54 = vpop.f32.mrf.mxu0 }
 0x2d1   :  { %v3579_v40 = vpop.f32.mrf.mxu2  ;;  %v1366_v16 = vpop.f32.mrf.mxu3 }
 0x2d2   :  { %v890_v11 = vmax.f32 %v758_v57, 0.0  ;;  %v1367_v24 = vadd.f32 %v1366_v16, %v3357_v47  ;;  %v2410_v47 = vld [vmem:[%s3751_s0 + $0xe8] sm:$0xff] }
 0x2d4   :  { %v960_v15 = vpack.c.bf16 %v890_v11, %v888_v61  ;;  %v1773_v59 = vadd.f32 %v1772_v51, %v1367_v24 }
 0x2d6   :  { %v1880_v37 = vadd.f32 %v3117_v6, %v1773_v59  ;;  %1408 = vmatmul.bf16.gmra.mxu3 %v960_v15  ;;  %v3596_v6 = vld [vmem:[%s3752_s6] ss:$0 sm:$0xff] }
 0x2d7   :  { %v760_v52 = vpop.f32.mrf.mxu1 }
 0x2d8   :  { %1943 = vst [vmem:[%s3753_s7 + $0x128] sm:$0xff] %v1880_v37  ;;  %v1785_v0 = vpop.f32.mrf.mxu0  ;;  %v761_v51 = vadd.f32 %v760_v52, %v2935_v46 }
 0x2d9   :  { %v3586_v33 = vpop.f32.mrf.mxu2  ;;  %v1369_v42 = vpop.f32.mrf.mxu3 }
 0x2da   :  { %v1370_v32 = vadd.f32 %v1369_v42, %v3367_v12  ;;  %v892_v35 = vmax.f32 %v761_v51, 0.0 }
 0x2db   :  { %1824 = vmatmul.bf16.gmra.mxu0 %v2410_v47 }
 0x2dc   :  { %v1776_v48 = vadd.f32 %v1775_v56, %v1370_v32 }
 0x2de   :  { %v1881_v28 = vadd.f32 %v3596_v6, %v1776_v48 }
 0x2df   :  { %v762_v18 = vpop.f32.mrf.mxu1 }
 0x2e0   :  { %1944 = vst [vmem:[%s3753_s7 + $0x130] sm:$0xff] %v1881_v28  ;;  %v763_v12 = vadd.f32 %v762_v18, %v2935_v46  ;;  %v1787_v41 = vpop.f32.mrf.mxu0 }
 0x2e1   :  { %v3603_v19 = vpop.f32.mrf.mxu2  ;;  %v1371_v56 = vpop.f32.mrf.mxu3 }
 0x2e2   :  { %v894_v23 = vmax.f32 %v763_v12, 0.0  ;;  %v1372_v30 = vadd.f32 %v1371_v56, %v3390_v36  ;;  %v2411_v36 = vld [vmem:[%s3751_s0 + $0xf0] sm:$0xff] }
 0x2e4   :  { %v962_v17 = vpack.c.bf16 %v894_v23, %v892_v35  ;;  %v1778_v53 = vadd.f32 %v1777_v7, %v1372_v30 }
 0x2e6   :  { %v1882_v10 = vadd.f32 %v3596_v6, %v1778_v53  ;;  %1413 = vmatmul.bf16.gmra.mxu3 %v962_v17 }
 0x2e7   :  { %v765_v31 = vpop.f32.mrf.mxu1 }
 0x2e8   :  { %1945 = vst [vmem:[%s3753_s7 + $0x138] sm:$0xff] %v1882_v10  ;;  %v1790_v4 = vpop.f32.mrf.mxu0  ;;  %v766_v7 = vadd.f32 %v765_v31, %v2935_v46 }
 0x2e9   :  { %v3610_v49 = vpop.f32.mrf.mxu2  ;;  %v1374_v2 = vpop.f32.mrf.mxu3 }
 0x2ea   :  { %v1375_v45 = vadd.f32 %v1374_v2, %v3400_v1 }
 0x2eb   :  { %1829 = vmatmul.bf16.gmra.mxu0 %v2411_v36 }
 0x2ec   :  { %v1781_v22 = vadd.f32 %v1780_v34, %v1375_v45  ;;  %v896_v34 = vmax.f32 %v766_v7, 0.0 }
 0x2ee   :  { %v1883_v39 = vadd.f32 %v3596_v6, %v1781_v22 }
 0x2ef   :  { %v767_v50 = vpop.f32.mrf.mxu1 }
 0x2f0   :  { %1946 = vst [vmem:[%s3753_s7 + $0x140] sm:$0xff] %v1883_v39  ;;  %v768_v38 = vadd.f32 %v767_v50, %v2935_v46  ;;  %v1792_v5 = vpop.f32.mrf.mxu0  ;;  %v89_v50 = vld [vmem:[%s3751_s0 + $0xf8] sm:$0xf] }
 0x2f1   :  { %v3622_v13 = vpop.f32.mrf.mxu2  ;;  %v1376_v1 = vpop.f32.mrf.mxu3 }
 0x2f2   :  { %v898_v8 = vmax.f32 %v768_v38, 0.0  ;;  %v1377_v20 = vadd.f32 %v1376_v1, %v3423_v21 }
 0x2f4   :  { %v964_v63 = vpack.c.bf16 %v898_v8, %v896_v34  ;;  %v1783_v57 = vadd.f32 %v1782_v54, %v1377_v20 }
 0x2f6   :  { %v1884_v16 = vadd.f32 %v3596_v6, %v1783_v57  ;;  %1418 = vmatmul.bf16.gmra.mxu3 %v964_v63 }
 0x2f7   :  { %v770_v61 = vpop.f32.mrf.mxu1 }
 0x2f8   :  { %1947 = vst [vmem:[%s3753_s7 + $0x148] sm:$0xff] %v1884_v16  ;;  %v1795_v59 = vpop.f32.mrf.mxu0  ;;  %v771_v21 = vadd.f32 %v770_v61, %v2935_v46 }
 0x2f9   :  { %v3629_v11 = vpop.f32.mrf.mxu2  ;;  %v1379_v24 = vpop.f32.mrf.mxu3 }
 0x2fa   :  { %v1380_v15 = vadd.f32 %v1379_v24, %v3433_v55  ;;  %v900_v47 = vmax.f32 %v771_v21, 0.0 }
 0x2fc   :  { %v1786_v37 = vadd.f32 %v1785_v0, %v1380_v15 }
 0x2fe   :  { %v1885_v52 = vadd.f32 %v3596_v6, %v1786_v37 }
 0x2ff   :  { %v772_v54 = vpop.f32.mrf.mxu1 }
 0x300   :  { %1948 = vst [vmem:[%s3753_s7 + $0x150] sm:$0xff] %v1885_v52  ;;  %v773_v42 = vadd.f32 %v772_v54, %v2935_v46  ;;  %v1797_v18 = vpop.f32.mrf.mxu0 }
 0x301   :  { %v3638_v32 = vpop.f32.mrf.mxu2  ;;  %v1381_v48 = vpop.f32.mrf.mxu3 }
 0x302   :  { %v902_v51 = vmax.f32 %v773_v42, 0.0  ;;  %v1382_v55 = vadd.f32 %v1381_v48, %v3454_v26 }
 0x304   :  { %v966_v28 = vpack.c.bf16 %v902_v51, %v900_v47  ;;  %v1788_v0 = vadd.f32 %v1787_v41, %v1382_v55 }
 0x306   :  { %v1886_v12 = vadd.f32 %v3596_v6, %v1788_v0  ;;  %1423 = vmatmul.bf16.gmra.mxu3 %v966_v28 }
 0x307   :  { %v775_v56 = vpop.f32.mrf.mxu1 }
 0x308   :  { %1949 = vst [vmem:[%s3753_s7 + $0x158] sm:$0xff] %v1886_v12  ;;  %v776_v30 = vadd.f32 %v775_v56, %v2935_v46  ;;  %v1800_v31 = vpop.f32.mrf.mxu0 }
 0x309   :  { %v3645_v35 = vpop.f32.mrf.mxu2  ;;  %v1384_v23 = vpop.f32.mrf.mxu3 }
 0x30a   :  { %v1385_v17 = vadd.f32 %v1384_v23, %v3462_v27  ;;  %v904_v26 = vmax.f32 %v776_v30, 0.0 }
 0x30c   :  { %v1791_v53 = vadd.f32 %v1790_v4, %v1385_v17  ;;  %v968_v22 = vpack.c.bf16 %v904_v26, %v904_v26 }
 0x30e   :  { %v1887_v41 = vadd.f32 %v3596_v6, %v1791_v53 }
 0x30f   :  { %v777_v10 = vpop.f32.mrf.mxu1 }
 0x310   :  { %1950 = vst [vmem:[%s3753_s7 + $0x160] sm:$0xff] %v1887_v41  ;;  %v1802_v4 = vpop.f32.mrf.mxu0 }
 0x311   :  { %v1263_v2 = vpop.f32.mrf.mxu2  ;;  %v1386_v45 = vpop.f32.mrf.mxu3 }
 0x312   :  { %v1387_v36 = vadd.f32 %v1386_v45, %v3481_v44  ;;  %v1558_v44 = vunpack.c.l.b16 %v89_v50 }
 0x314   :  { %v1793_v7 = vadd.f32 %v1792_v5, %v1387_v36  ;;  %v1590_v20 = vpack.c.b16 %v1558_v44, %v1558_v44 }
 0x316   :  { %v1888_v46 = vadd.f32 %v3596_v6, %v1793_v7  ;;  %1428 = vmatmul.bf16.gmra.mxu3 %v968_v22 }
 0x318   :  { %1951 = vst [vmem:[%s3753_s7 + $0x168] sm:$0xff] %v1888_v46  ;;  %v1805_v5 = vpop.f32.mrf.mxu0 }
 0x319   :  { %v1389_v27 = vpop.f32.mrf.mxu3 }
 0x31a   :  { %v1390_v39 = vadd.f32 %v1389_v27, %v3489_v43 }
 0x31c   :  { %v1796_v38 = vadd.f32 %v1795_v59, %v1390_v39 }
 0x31e   :  { %v1889_v1 = vadd.f32 %v3596_v6, %v1796_v38 }
 0x320   :  { %1952 = vst [vmem:[%s3753_s7 + $0x170] sm:$0xff] %v1889_v1  ;;  %v1807_v24 = vpop.f32.mrf.mxu0 }
 0x321   :  { %v1391_v34 = vpop.f32.mrf.mxu3 }
 0x322   :  { %v1392_v8 = vadd.f32 %v1391_v34, %v3503_v29 }
 0x324   :  { %v1798_v63 = vadd.f32 %v1797_v18, %v1392_v8 }
 0x326   :  { %v1890_v43 = vadd.f32 %v3596_v6, %v1798_v63  ;;  %1834 = vmatmul.bf16.vlgmr.msra.gmra.mxu3 %v1590_v20 }
 0x328   :  { %1953 = vst [vmem:[%s3753_s7 + $0x178] sm:$0xff] %v1890_v43  ;;  %v1810_v52 = vpop.f32.mrf.mxu0 }
 0x329   :  { %v1394_v57 = vpop.f32.mrf.mxu3 }
 0x32a   :  { %v1395_v16 = vadd.f32 %v1394_v57, %v3510_v60 }
 0x32c   :  { %v1801_v61 = vadd.f32 %v1800_v31, %v1395_v16 }
 0x32e   :  { %v1891_v15 = vadd.f32 %v3596_v6, %v1801_v61 }
 0x330   :  { %1954 = vst [vmem:[%s3753_s7 + $0x180] sm:$0xff] %v1891_v15 }
 0x331   :  { %v1396_v29 = vpop.f32.mrf.mxu3 }
 0x332   :  { %v1397_v59 = vadd.f32 %v1396_v29, %v3522_v14  ;;  %v1812_v14 = vpop.f32.mrf.mxu0 }
 0x334   :  { %v1803_v37 = vadd.f32 %v1802_v4, %v1397_v59 }
 0x336   :  { %v1892_v21 = vadd.f32 %v3596_v6, %v1803_v37 }
 0x338   :  { %1955 = vst [vmem:[%s3753_s7 + $0x188] sm:$0xff] %v1892_v21 }
 0x339   :  { %v1399_v60 = vpop.f32.mrf.mxu3 }
 0x33a   :  { %v1400_v54 = vadd.f32 %v1399_v60, %v3529_v9  ;;  %v1815_v18 = vpop.f32.mrf.mxu0 }
 0x33c   :  { %v1806_v42 = vadd.f32 %v1805_v5, %v1400_v54 }
 0x33e   :  { %v1893_v48 = vadd.f32 %v3596_v6, %v1806_v42 }
 0x340   :  { %1956 = vst [vmem:[%s3753_s7 + $0x190] sm:$0xff] %v1893_v48 }
 0x341   :  { %v1401_v47 = vpop.f32.mrf.mxu3 }
 0x342   :  { %v1402_v51 = vadd.f32 %v1401_v47, %v3541_v3  ;;  %v1817_v17 = vpop.f32.mrf.mxu0 }
 0x344   :  { %v1808_v55 = vadd.f32 %v1807_v24, %v1402_v51 }
 0x346   :  { %v1894_v28 = vadd.f32 %v3596_v6, %v1808_v55 }
 0x348   :  { %1957 = vst [vmem:[%s3753_s7 + $0x198] sm:$0xff] %v1894_v28 }
 0x349   :  { %v1404_v0 = vpop.f32.mrf.mxu3 }
 0x34a   :  { %v1405_v9 = vadd.f32 %v1404_v0, %v3548_v58  ;;  %v1820_v31 = vpop.f32.mrf.mxu0 }
 0x34c   :  { %v1811_v12 = vadd.f32 %v1810_v52, %v1405_v9 }
 0x34e   :  { %v1895_v56 = vadd.f32 %v3596_v6, %v1811_v12 }
 0x350   :  { %1958 = vst [vmem:[%s3753_s7 + $0x1a0] sm:$0xff] %v1895_v56 }
 0x351   :  { %v1406_v23 = vpop.f32.mrf.mxu3 }
 0x352   :  { %v1407_v3 = vadd.f32 %v1406_v23, %v3560_v25 }
 0x354   :  { %v1813_v30 = vadd.f32 %v1812_v14, %v1407_v3 }
 0x356   :  { %v1896_v53 = vadd.f32 %v3596_v6, %v1813_v30 }
 0x358   :  { %1959 = vst [vmem:[%s3753_s7 + $0x1a8] sm:$0xff] %v1896_v53 }
 0x359   :  { %v1409_v58 = vpop.f32.mrf.mxu3 }
 0x35a   :  { %v1410_v26 = vadd.f32 %v1409_v58, %v3567_v62  ;;  %v1822_v62 = vpop.f32.mrf.mxu0 }
 0x35c   :  { %v1816_v41 = vadd.f32 %v1815_v18, %v1410_v26 }
 0x35e   :  { %v1897_v10 = vadd.f32 %v3596_v6, %v1816_v41 }
 0x360   :  { %1960 = vst [vmem:[%s3753_s7 + $0x1b0] sm:$0xff] %v1897_v10 }
 0x361   :  { %v1411_v25 = vpop.f32.mrf.mxu3 }
 0x362   :  { %v1412_v2 = vadd.f32 %v1411_v25, %v3579_v40  ;;  %v1825_v39 = vpop.f32.mrf.mxu0 }
 0x364   :  { %v1818_v45 = vadd.f32 %v1817_v17, %v1412_v2 }
 0x366   :  { %v1898_v22 = vadd.f32 %v3596_v6, %v1818_v45 }
 0x368   :  { %1961 = vst [vmem:[%s3753_s7 + $0x1b8] sm:$0xff] %v1898_v22 }
 0x369   :  { %v1414_v36 = vpop.f32.mrf.mxu3 }
 0x36a   :  { %v1415_v7 = vadd.f32 %v1414_v36, %v3586_v33  ;;  %v1827_v34 = vpop.f32.mrf.mxu0 }
 0x36c   :  { %v1821_v46 = vadd.f32 %v1820_v31, %v1415_v7 }
 0x36e   :  { %v1899_v27 = vadd.f32 %v3596_v6, %v1821_v46 }
 0x370   :  { %1962 = vst [vmem:[%s3753_s7 + $0x1c0] sm:$0xff] %v1899_v27 }
 0x371   :  { %v1416_v4 = vpop.f32.mrf.mxu3 }
 0x372   :  { %v1417_v40 = vadd.f32 %v1416_v4, %v3603_v19  ;;  %v1830_v43 = vpop.f32.mrf.mxu0 }
 0x374   :  { %v1823_v50 = vadd.f32 %v1822_v62, %v1417_v40 }
 0x376   :  { %v1900_v38 = vadd.f32 %v3596_v6, %v1823_v50 }
 0x378   :  { %1963 = vst [vmem:[%s3753_s7 + $0x1c8] sm:$0xff] %v1900_v38 }
 0x379   :  { %v1419_v1 = vpop.f32.mrf.mxu3 }
 0x37a   :  { %v1420_v33 = vadd.f32 %v1419_v1, %v3610_v49 }
 0x37c   :  { %v1826_v44 = vadd.f32 %v1825_v39, %v1420_v33 }
 0x37e   :  { %v1901_v8 = vadd.f32 %v3596_v6, %v1826_v44 }
 0x380   :  { %1964 = vst [vmem:[%s3753_s7 + $0x1d0] sm:$0xff] %v1901_v8 }
 0x381   :  { %v1421_v19 = vpop.f32.mrf.mxu3 }
 0x382   :  { %v1422_v20 = vadd.f32 %v1421_v19, %v3622_v13  ;;  %v1832_v13 = vpop.f32.mrf.mxu0 }
 0x384   :  { %v1828_v5 = vadd.f32 %v1827_v34, %v1422_v20 }
 0x386   :  { %v1902_v63 = vadd.f32 %v3596_v6, %v1828_v5 }
 0x388   :  { %1965 = vst [vmem:[%s3753_s7 + $0x1d8] sm:$0xff] %v1902_v63 }
 0x389   :  { %v1424_v49 = vpop.f32.mrf.mxu3 }
 0x38a   :  { %v1425_v57 = vadd.f32 %v1424_v49, %v3629_v11 }
 0x38c   :  { %v1831_v16 = vadd.f32 %v1830_v43, %v1425_v57 }
 0x38e   :  { %v1903_v61 = vadd.f32 %v3596_v6, %v1831_v16 }
 0x390   :  { %1966 = vst [vmem:[%s3753_s7 + $0x1e0] sm:$0xff] %v1903_v61 }
 0x391   :  { %v1426_v24 = vpop.f32.mrf.mxu3 }
 0x392   :  { %v1427_v15 = vadd.f32 %v1426_v24, %v3638_v32 }
 0x394   :  { %v1833_v29 = vadd.f32 %v1832_v13, %v1427_v15 }
 0x396   :  { %v1904_v59 = vadd.f32 %v3596_v6, %v1833_v29 }
 0x398   :  { %1967 = vst [vmem:[%s3753_s7 + $0x1e8] sm:$0xff] %v1904_v59 }
 0x399   :  { %v1429_v37 = vpop.f32.mrf.mxu3 }
 0x39a   :  { %v1430_v21 = vadd.f32 %v1429_v37, %v3645_v35 }
 0x3a1   :  { %v1431_v11 = vpop.f32.mrf.mxu3 }
 0x3a9   :  { %v1835_v52 = vpop.f32.mrf.mxu3 }
 0x3aa   :  { %v1836_v60 = vadd.f32 %v1835_v52, %v1430_v21 }
 0x3ac   :  { %v1905_v54 = vadd.f32 %v3596_v6, %v1836_v60 }
 0x3ae   :  { %1968 = vst [vmem:[%s3753_s7 + $0x1f0] sm:$0xff] %v1905_v54 }
 0x3b1   :  { %v1837_v32 = vpop.f32.mrf.mxu3 }

</bundles_post_ra>
